<compile_context>
chip_gen: v5e
topology: v5e:2x2
jax: 0.10.0
libtpu: 0.0.40
codegen_flags: <defaults>
</compile_context>

<pallas_src>
import math
import functools

import jax
import jax.numpy as jnp
from jax import lax
from jax.experimental import pallas as pl
from jax.experimental.pallas import tpu as pltpu


_MAX_FULL_DIM = 512  # largest dim we allow as a single un-tiled block


def _round_up(x, m):
    return (x + m - 1) // m * m


@functools.lru_cache(maxsize=None)
def _vmem_limit_bytes():
    """Per-generation scoped-VMEM budget (~48 MiB v7x, 64 MiB v5e/v6e)."""
    cap = 128 * 1024 * 1024
    try:
        cap = int(getattr(pltpu.get_tpu_info(), "vmem_capacity_bytes", cap))
    except Exception:
        pass
    return int(min(3 * cap // 4, 64 * 1024 * 1024))


def _pick_tile(dim, candidates):
    """Returns (tile, padded_dim).

    Largest candidate that exactly divides `dim`; else the full dim when it is
    small; else pad up to a 128 multiple (never a silent huge full-dim block).
    """
    for c in candidates:
        if c <= dim and dim % c == 0:
            return c, dim
    if dim <= _MAX_FULL_DIM:
        return dim, dim
    padded = _round_up(dim, 128)
    for c in candidates:
        if c <= padded and padded % c == 0:
            return c, padded
    return 128, padded


# ------------------------- batched tiled linear -----------------------------


def _linear_kernel(x_ref, w_ref, b_ref, o_ref, acc_ref):
    # blocks: x (1, tm, tk), w (1, tk, tn), b (1, 1, tn), o (1, tm, tn)
    k = pl.program_id(3)

    @pl.when(k == 0)
    def _():
        acc_ref[...] = jnp.zeros_like(acc_ref)

    acc_ref[...] += jnp.dot(
        x_ref[0], w_ref[0], preferred_element_type=jnp.float32
    )

    @pl.when(k == pl.num_programs(3) - 1)
    def _():
        o_ref[0] = (acc_ref[...] + b_ref[0]).astype(o_ref.dtype)


def batched_linear(x, w, b):
    """x: (P, M, Din) @ w: (P, Din, Dout) + b: (P, Dout) -> (P, M, Dout)."""
    P, M, Din = x.shape
    Dout = w.shape[2]

    tm, m_pad = _pick_tile(M, (512, 256, 128))
    tk, k_pad = _pick_tile(Din, (1024, 512, 256, 128))
    tn, n_pad = _pick_tile(Dout, (1024, 512, 256, 128))

    if m_pad != M or k_pad != Din:
        x = jnp.pad(x, ((0, 0), (0, m_pad - M), (0, k_pad - Din)))
    if k_pad != Din or n_pad != Dout:
        w = jnp.pad(w, ((0, 0), (0, k_pad - Din), (0, n_pad - Dout)))
    b3 = b.reshape(P, 1, Dout)
    if n_pad != Dout:
        b3 = jnp.pad(b3, ((0, 0), (0, 0), (0, n_pad - Dout)))

    # M (typically the largest extent) leads so parallel work splits evenly
    # across the two TensorCores on v7x; the K reduction stays innermost.
    grid = (m_pad // tm, n_pad // tn, P, k_pad // tk)

    itemsize = jnp.dtype(x.dtype).itemsize
    cost = pl.CostEstimate(
        flops=2 * P * m_pad * k_pad * n_pad,
        transcendentals=0,
        bytes_accessed=itemsize
        * (P * m_pad * k_pad * (n_pad // tn)
           + P * k_pad * n_pad * (m_pad // tm)
           + P * m_pad * n_pad
           + P * n_pad),
    )

    out = pl.pallas_call(
        _linear_kernel,
        out_shape=jax.ShapeDtypeStruct((P, m_pad, n_pad), x.dtype),
        grid_spec=pltpu.PrefetchScalarGridSpec(
            num_scalar_prefetch=0,
            grid=grid,
            in_specs=[
                pl.BlockSpec((1, tm, tk), lambda i, j, p, k: (p, i, k)),
                pl.BlockSpec((1, tk, tn), lambda i, j, p, k: (p, k, j)),
                pl.BlockSpec((1, 1, tn), lambda i, j, p, k: (p, 0, j)),
            ],
            out_specs=pl.BlockSpec((1, tm, tn), lambda i, j, p, k: (p, i, j)),
            scratch_shapes=[pltpu.VMEM((tm, tn), jnp.float32)],
        ),
        compiler_params=pltpu.CompilerParams(
            dimension_semantics=("parallel", "parallel", "parallel",
                                 "arbitrary"),
            vmem_limit_bytes=_vmem_limit_bytes(),
        ),
        cost_estimate=cost,
    )(x, w, b3)

    if m_pad != M or n_pad != Dout:
        out = out[:, :M, :Dout]
    return out


# ------------------------- flash-style attention ----------------------------


def _pick_lane_block(batch, n_heads, d_head, max_lanes=256):
    """Lane width (head group) handled per attention grid step.

    Prefer a multiple of 128 so the output block / DMA is lane-dense; fall
    back to the full packed width when d_model is not 128-aligned (tiny
    models), which is still a valid full-dim block.
    """
    d_model = n_heads * d_head
    if d_model % 128 != 0:
        # TODO(synk): for large batch*d_model with a 128-unaligned d_model a
        # transposed per-(batch, head) layout would avoid unrolling all
        # batch*n_heads head slices inside one grid step.
        return batch * d_model
    valid = [g * d_head for g in range(1, n_heads + 1)
             if n_heads % g == 0 and (g * d_head) % 128 == 0]
    fitting = [lanes for lanes in valid if lanes <= max_lanes]
    return max(fitting) if fitting else min(valid)


def _flash_attn_kernel(q_ref, k_ref, v_ref, o_ref, m_ref, l_ref, acc_ref, *,
                       scale, d_head, n_slices, kv_len, kv_tile, needs_mask):
    # blocks: q (tq, Dg), k/v (tk, Dg), o (tq, Dg); grid (lane_block, qi, ki).
    # Each of the n_slices lane slices of width d_head is one (batch, head).
    ki = pl.program_id(2)

    @pl.when(ki == 0)
    def _():
        m_ref[...] = jnp.full(m_ref.shape, -jnp.inf, m_ref.dtype)
        l_ref[...] = jnp.zeros(l_ref.shape, l_ref.dtype)
        acc_ref[...] = jnp.zeros(acc_ref.shape, acc_ref.dtype)

    # Scale Q (tq x Dg) once instead of every (tq x tk) score tile.
    q = q_ref[...] * scale
    k = k_ref[...]
    v = v_ref[...]

    if needs_mask:
        key_idx = ki * kv_tile + lax.broadcasted_iota(
            jnp.int32, (1, kv_tile), 1)
        neg_bias = jnp.where(key_idx < kv_len, 0.0, -jnp.inf).astype(
            jnp.float32)

    for g in range(n_slices):
        lo, hi = g * d_head, (g + 1) * d_head
        # MXU consumes native-dtype operands with f32 accumulation; contract
        # the d_head axes directly (no transpose copy of K).
        s = lax.dot_general(
            q[:, lo:hi], k[:, lo:hi],
            dimension_numbers=(((1,), (1,)), ((), ())),
            preferred_element_type=jnp.float32,
        )                                                    # (tq, tk) f32
        if needs_mask:
            s = s + neg_bias

        m_prev = m_ref[:, g:g + 1]
        m_new = jnp.maximum(m_prev, jnp.max(s, axis=-1, keepdims=True))
        alpha = jnp.exp(m_prev - m_new)
        p = jnp.exp(s - m_new)                               # f32 statistics
        l_ref[:, g:g + 1] = alpha * l_ref[:, g:g + 1] + jnp.sum(
            p, axis=-1, keepdims=True)
        acc_ref[:, lo:hi] = alpha * acc_ref[:, lo:hi] + jnp.dot(
            p.astype(v.dtype), v[:, lo:hi],
            preferred_element_type=jnp.float32)
        m_ref[:, g:g + 1] = m_new

    @pl.when(ki == pl.num_programs(2) - 1)
    def _():
        # Normalize only the (tq, Dg) output, never any S x S score matrix.
        # Approx reciprocal (EUP slot) + one Newton step keeps ~1e-4 parity.
        for g in range(n_slices):
            lo, hi = g * d_head, (g + 1) * d_head
            l_g = l_ref[:, g:g + 1]
            r = pl.reciprocal(l_g, approx=True)
            r = r * (2.0 - l_g * r)
            o_ref[:, lo:hi] = (acc_ref[:, lo:hi] * r).astype(o_ref.dtype)


def flash_attention_packed(q, k, v, *, batch, n_heads, scale):
    """q/k/v: (S, batch*d_model) lane-packed; softmax over keys per head."""
    S, BD = q.shape
    d_model = BD // batch
    d_head = d_model // n_heads

    lane_block = _pick_lane_block(batch, n_heads, d_head)
    n_lane_blocks = BD // lane_block
    n_slices = lane_block // d_head

    tq, s_pad = _pick_tile(S, (1024, 512, 256, 128))
    tk, s_pad_k = _pick_tile(S, (512, 256, 128))
    assert s_pad == s_pad_k
    needs_mask = s_pad != S
    if needs_mask:
        pad = ((0, s_pad - S), (0, 0))
        q = jnp.pad(q, pad)
        k = jnp.pad(k, pad)
        v = jnp.pad(v, pad)

    grid = (n_lane_blocks, s_pad // tq, s_pad // tk)

    itemsize = jnp.dtype(q.dtype).itemsize
    n_q_passes = s_pad // tq
    cost = pl.CostEstimate(
        flops=4 * S * S * BD,                       # QK^T + PV over all (b,h)
        transcendentals=batch * n_heads * S * S,    # exp
        bytes_accessed=itemsize * (2 * S * BD       # Q read + O write
                                   + 2 * S * BD * n_q_passes),  # K/V restream
    )

    kern = functools.partial(
        _flash_attn_kernel, scale=scale, d_head=d_head, n_slices=n_slices,
        kv_len=S, kv_tile=tk, needs_mask=needs_mask)

    out = pl.pallas_call(
        kern,
        out_shape=jax.ShapeDtypeStruct((s_pad, BD), q.dtype),
        grid_spec=pltpu.PrefetchScalarGridSpec(
            num_scalar_prefetch=0,
            grid=grid,
            in_specs=[
                pl.BlockSpec((tq, lane_block), lambda lb, qi, ki: (qi, lb)),
                pl.BlockSpec((tk, lane_block), lambda lb, qi, ki: (ki, lb)),
                pl.BlockSpec((tk, lane_block), lambda lb, qi, ki: (ki, lb)),
            ],
            out_specs=pl.BlockSpec((tq, lane_block),
                                   lambda lb, qi, ki: (qi, lb)),
            scratch_shapes=[
                pltpu.VMEM((tq, n_slices), jnp.float32),    # m (running max)
                pltpu.VMEM((tq, n_slices), jnp.float32),    # l (running denom)
                pltpu.VMEM((tq, lane_block), jnp.float32),  # unnormalized out
            ],
        ),
        compiler_params=pltpu.CompilerParams(
            dimension_semantics=("parallel", "parallel", "arbitrary"),
            vmem_limit_bytes=_vmem_limit_bytes(),
        ),
        cost_estimate=cost,
    )(q, k, v)

    if needs_mask:
        out = out[:S]
    return out


# ----------------------------- Module wrapper --------------------------------


def init_params(key, d_model, n_heads, dtype=jnp.float32):
    d_head = d_model // n_heads
    ks = jax.random.split(key, 8)
    lim = 1.0 / math.sqrt(d_model)

    def lin(kw, kb, din, dout):
        w = jax.random.uniform(kw, (din, dout), dtype, -lim, lim)
        b = jax.random.uniform(kb, (dout,), dtype, -lim, lim)
        return w, b

    wq, bq = lin(ks[0], ks[1], d_model, n_heads * d_head)
    wk, bk = lin(ks[2], ks[3], d_model, n_heads * d_head)
    wv, bv = lin(ks[4], ks[5], d_model, n_heads * d_head)
    wo, bo = lin(ks[6], ks[7], d_model, d_model)
    return dict(
        wqkv=jnp.stack([wq, wk, wv]),                  # (3, D, D)
        bqkv=jnp.stack([bq, bk, bv]),                  # (3, D)
        wqkv_cat=jnp.concatenate([wq, wk, wv], 1),     # (D, 3D) self-attn path
        bqkv_cat=jnp.concatenate([bq, bk, bv], 0),     # (3D,)
        wo=wo, bo=bo,
    )


def multi_head_attention(params, query, key, value, n_heads,
                         self_attention=False):
    """query/key/value: (seq, batch, d_model) -> (seq, batch, d_model)."""
    S, B, D = query.shape
    d_head = D // n_heads
    M = S * B
    scale = 1.0 / math.sqrt(d_head)

    if self_attention:
        # One (M, D) @ (D, 3D) matmul: activations read once, lane-dense 3D
        # output, no stacked-slab HBM round trip.
        qkv = batched_linear(query.reshape(1, M, D),
                             params["wqkv_cat"][None],
                             params["bqkv_cat"][None])[0]         # (M, 3D)
        q2, k2, v2 = qkv[:, :D], qkv[:, D:2 * D], qkv[:, 2 * D:]
    else:
        x3 = jnp.stack([query.reshape(M, D), key.reshape(M, D),
                        value.reshape(M, D)], axis=0)             # (3, M, D)
        qkv = batched_linear(x3, params["wqkv"], params["bqkv"])
        q2, k2, v2 = qkv[0], qkv[1], qkv[2]

    # (M, D) == (S*B, D) -> (S, B*D): contiguous reshape, no transpose.
    o = flash_attention_packed(
        q2.reshape(S, B * D), k2.reshape(S, B * D), v2.reshape(S, B * D),
        batch=B, n_heads=n_heads, scale=scale)                    # (S, B*D)

    out = batched_linear(o.reshape(1, M, D), params["wo"][None],
                         params["bo"][None])                      # (1, M, D)
    return out[0].reshape(S, B, D)


def reference(params, query, key, value, n_heads):
    """Pure-JAX reference of the same semantics for a sanity check."""
    S, B, D = query.shape
    d_head = D // n_heads
    scale = 1.0 / math.sqrt(d_head)

    def proj(x, w, b):
        return (x @ w + b).reshape(S, B, n_heads, d_head)

    q = proj(query, params["wqkv"][0], params["bqkv"][0])
    k = proj(key, params["wqkv"][1], params["bqkv"][1])
    v = proj(value, params["wqkv"][2], params["bqkv"][2])
    scores = jnp.einsum("ibhd,jbhd->ibhj", q, k) * scale
    attn = jax.nn.softmax(scores, axis=-1)
    x = jnp.einsum("ibhj,jbhd->ibhd", attn, v).reshape(S, B, D)
    return x @ params["wo"] + params["bo"]


if __name__ == "__main__":
    seq_len, batch, d_model, n_heads = 8, 2, 32, 4

    root = jax.random.PRNGKey(0)
    kp, kq, kk, kv = jax.random.split(root, 4)
    params = init_params(kp, d_model, n_heads)

    q_in = jax.random.normal(kq, (seq_len, batch, d_model), jnp.float32)
    k_in = jax.random.normal(kk, (seq_len, batch, d_model), jnp.float32)
    v_in = jax.random.normal(kv, (seq_len, batch, d_model), jnp.float32)

    mha = jax.jit(multi_head_attention, static_argnums=(4, 5))

    # Cross-attention path (distinct q/k/v -> batched stacked projection).
    out = jax.block_until_ready(mha(params, q_in, k_in, v_in, n_heads, False))
    ref = reference(params, q_in, k_in, v_in, n_heads)
    assert out.shape == (seq_len, batch, d_model)
    assert jnp.allclose(out, ref, atol=1e-4, rtol=1e-4)

    # Self-attention fast path (single fused (M, D) @ (D, 3D) projection).
    out_sa = jax.block_until_ready(
        mha(params, q_in, q_in, q_in, n_heads, True))
    ref_sa = reference(params, q_in, q_in, q_in, n_heads)
    assert jnp.allclose(out_sa, ref_sa, atol=1e-4, rtol=1e-4)

    print("KERNEL_OK")
</pallas_src>

<mosaic_0001>
module attributes {stable_mosaic.version = 11 : i64} {
  func.func @_linear_kernel(%arg0: i32, %arg1: i32, %arg2: i32, %arg3: i32, %arg4: memref<1x16x32xf32, #tpu.memory_space<vmem>>, %arg5: memref<1x32x32xf32, #tpu.memory_space<vmem>>, %arg6: memref<1x1x32xf32, #tpu.memory_space<vmem>>, %arg7: memref<1x16x32xf32, #tpu.memory_space<vmem>>, %arg8: memref<16x32xf32, #tpu.memory_space<vmem>>) attributes {dimension_semantics = [#tpu.dimension_semantics<parallel>, #tpu.dimension_semantics<parallel>, #tpu.dimension_semantics<parallel>, #tpu.dimension_semantics<arbitrary>], iteration_bounds = array<i64: 1, 1, 3, 1>, scalar_prefetch = 0 : i64, scratch_operands = 1 : i64, tpu.core_type = #tpu.core_type<tc>, window_params = [{transform_indices = @transform_0, window_bounds = array<i64: 1, 16, 32>}, {transform_indices = @transform_1, window_bounds = array<i64: 1, 32, 32>}, {transform_indices = @transform_2, window_bounds = array<i64: 1, 1, 32>}, {transform_indices = @transform_3, window_bounds = array<i64: 1, 16, 32>}]} {
    %c0_i32 = arith.constant 0 : i32
    %0 = arith.cmpi eq, %arg3, %c0_i32 : i32
    %1 = arith.extui %0 : i1 to i32
    %c0_i32_0 = arith.constant 0 : i32
    %2 = arith.cmpi ne, %1, %c0_i32_0 : i32
    scf.if %2 {
      %cst_12 = arith.constant 0.000000e+00 : f32
      %14 = vector.broadcast %cst_12 : f32 to vector<16x32xf32>
      %c0_13 = arith.constant 0 : index
      %c0_14 = arith.constant 0 : index
      %15 = vector.load %arg8[%c0_13, %c0_14] : memref<16x32xf32, #tpu.memory_space<vmem>>, vector<16x32xf32>
      tpu.vector_store %arg8[%c0_13, %c0_14], %14 {strides = array<i32>} : memref<16x32xf32, #tpu.memory_space<vmem>>, vector<16x32xf32>,
    } else {
    }
    %c0 = arith.constant 0 : index
    %c0_1 = arith.constant 0 : index
    %3 = vector.load %arg8[%c0, %c0_1] : memref<16x32xf32, #tpu.memory_space<vmem>>, vector<16x32xf32>
    %c0_2 = arith.constant 0 : index
    %c0_3 = arith.constant 0 : index
    %c0_4 = arith.constant 0 : index
    %4 = vector.load %arg4[%c0_2, %c0_3, %c0_4] : memref<1x16x32xf32, #tpu.memory_space<vmem>>, vector<1x16x32xf32>
    %5 = vector.shape_cast %4 : vector<1x16x32xf32> to vector<16x32xf32>
    %c0_5 = arith.constant 0 : index
    %c0_6 = arith.constant 0 : index
    %c0_7 = arith.constant 0 : index
    %6 = vector.load %arg5[%c0_5, %c0_6, %c0_7] : memref<1x32x32xf32, #tpu.memory_space<vmem>>, vector<1x32x32xf32>
    %7 = vector.shape_cast %6 : vector<1x32x32xf32> to vector<32x32xf32>
    %cst = arith.constant dense<0.000000e+00> : vector<16x32xf32>
    %8 = tpu.matmul %5, %7, %cst {dimension_numbers = #tpu.dot_dimension_numbers<[1], [0], [0], [1], [0, 0, 1, 1], [], []>} : vector<16x32xf32>, vector<32x32xf32>, vector<16x32xf32> -> vector<16x32xf32>
    %9 = arith.addf %3, %8 : vector<16x32xf32>
    %c0_8 = arith.constant 0 : index
    %c0_9 = arith.constant 0 : index
    %10 = vector.load %arg8[%c0_8, %c0_9] : memref<16x32xf32, #tpu.memory_space<vmem>>, vector<16x32xf32>
    tpu.vector_store %arg8[%c0_8, %c0_9], %9 {strides = array<i32>} : memref<16x32xf32, #tpu.memory_space<vmem>>, vector<16x32xf32>,
    %c0_i32_10 = arith.constant 0 : i32
    %11 = arith.cmpi eq, %arg3, %c0_i32_10 : i32
    %12 = arith.extui %11 : i1 to i32
    %c0_i32_11 = arith.constant 0 : i32
    %13 = arith.cmpi ne, %12, %c0_i32_11 : i32
    scf.if %13 {
      %c0_12 = arith.constant 0 : index
      %c0_13 = arith.constant 0 : index
      %14 = vector.load %arg8[%c0_12, %c0_13] : memref<16x32xf32, #tpu.memory_space<vmem>>, vector<16x32xf32>
      %c0_14 = arith.constant 0 : index
      %c0_15 = arith.constant 0 : index
      %c0_16 = arith.constant 0 : index
      %15 = vector.load %arg6[%c0_14, %c0_15, %c0_16] : memref<1x1x32xf32, #tpu.memory_space<vmem>>, vector<1x1x32xf32>
      %16 = vector.shape_cast %15 : vector<1x1x32xf32> to vector<1x32xf32>
      %17 = vector.broadcast %16 : vector<1x32xf32> to vector<16x32xf32>
      %18 = arith.addf %14, %17 : vector<16x32xf32>
      %c0_17 = arith.constant 0 : index
      %c0_18 = arith.constant 0 : index
      %c0_19 = arith.constant 0 : index
      %19 = vector.load %arg7[%c0_17, %c0_18, %c0_19] : memref<1x16x32xf32, #tpu.memory_space<vmem>>, vector<1x16x32xf32>
      %20 = vector.shape_cast %19 : vector<1x16x32xf32> to vector<16x32xf32>
      %21 = vector.shape_cast %18 : vector<16x32xf32> to vector<1x16x32xf32>
      tpu.vector_store %arg7[%c0_17, %c0_18, %c0_19], %21 {strides = array<i32>} : memref<1x16x32xf32, #tpu.memory_space<vmem>>, vector<1x16x32xf32>,
    } else {
    }
    return
  }
  func.func @transform_0(%arg0: i32, %arg1: i32, %arg2: i32, %arg3: i32) -> (i32, i32, i32) {
    %c0_i32 = arith.constant 0 : i32
    return %arg2, %arg0, %arg3 : i32, i32, i32
  }
  func.func @transform_1(%arg0: i32, %arg1: i32, %arg2: i32, %arg3: i32) -> (i32, i32, i32) {
    %c0_i32 = arith.constant 0 : i32
    return %arg2, %arg3, %arg1 : i32, i32, i32
  }
  func.func @transform_2(%arg0: i32, %arg1: i32, %arg2: i32, %arg3: i32) -> (i32, i32, i32) {
    %c0_i32 = arith.constant 0 : i32
    %c0_i32_0 = arith.constant 0 : i32
    return %arg2, %c0_i32, %arg1 : i32, i32, i32
  }
  func.func @transform_3(%arg0: i32, %arg1: i32, %arg2: i32, %arg3: i32) -> (i32, i32, i32) {
    %c0_i32 = arith.constant 0 : i32
    return %arg2, %arg0, %arg1 : i32, i32, i32
  }
}

module attributes {stable_mosaic.version = 11 : i64} {
  func.func @_flash_attn_kernel(%arg0: i32, %arg1: i32, %arg2: i32, %arg3: memref<8x64xf32, #tpu.memory_space<vmem>>, %arg4: memref<8x64xf32, #tpu.memory_space<vmem>>, %arg5: memref<8x64xf32, #tpu.memory_space<vmem>>, %arg6: memref<8x64xf32, #tpu.memory_space<vmem>>, %arg7: memref<8x8xf32, #tpu.memory_space<vmem>>, %arg8: memref<8x8xf32, #tpu.memory_space<vmem>>, %arg9: memref<8x64xf32, #tpu.memory_space<vmem>>) attributes {dimension_semantics = [#tpu.dimension_semantics<parallel>, #tpu.dimension_semantics<parallel>, #tpu.dimension_semantics<arbitrary>], iteration_bounds = array<i64: 1, 1, 1>, scalar_prefetch = 0 : i64, scratch_operands = 3 : i64, tpu.core_type = #tpu.core_type<tc>, window_params = [{transform_indices = @transform_0, window_bounds = array<i64: 8, 64>}, {transform_indices = @transform_1, window_bounds = array<i64: 8, 64>}, {transform_indices = @transform_2, window_bounds = array<i64: 8, 64>}, {transform_indices = @transform_3, window_bounds = array<i64: 8, 64>}]} {
    %c0_i32 = arith.constant 0 : i32
    %0 = arith.cmpi eq, %arg2, %c0_i32 : i32
    %1 = arith.extui %0 : i1 to i32
    %c0_i32_0 = arith.constant 0 : i32
    %2 = arith.cmpi ne, %1, %c0_i32_0 : i32
    scf.if %2 {
      %cst_122 = arith.constant 0xFF800000 : f32
      %219 = vector.broadcast %cst_122 : f32 to vector<8x8xf32>
      %c0_123 = arith.constant 0 : index
      %c0_124 = arith.constant 0 : index
      %220 = vector.load %arg7[%c0_123, %c0_124] : memref<8x8xf32, #tpu.memory_space<vmem>>, vector<8x8xf32>
      tpu.vector_store %arg7[%c0_123, %c0_124], %219 {strides = array<i32>} : memref<8x8xf32, #tpu.memory_space<vmem>>, vector<8x8xf32>,
      %cst_125 = arith.constant 0.000000e+00 : f32
      %221 = vector.broadcast %cst_125 : f32 to vector<8x8xf32>
      %c0_126 = arith.constant 0 : index
      %c0_127 = arith.constant 0 : index
      %222 = vector.load %arg8[%c0_126, %c0_127] : memref<8x8xf32, #tpu.memory_space<vmem>>, vector<8x8xf32>
      tpu.vector_store %arg8[%c0_126, %c0_127], %221 {strides = array<i32>} : memref<8x8xf32, #tpu.memory_space<vmem>>, vector<8x8xf32>,
      %cst_128 = arith.constant 0.000000e+00 : f32
      %223 = vector.broadcast %cst_128 : f32 to vector<8x64xf32>
      %c0_129 = arith.constant 0 : index
      %c0_130 = arith.constant 0 : index
      %224 = vector.load %arg9[%c0_129, %c0_130] : memref<8x64xf32, #tpu.memory_space<vmem>>, vector<8x64xf32>
      tpu.vector_store %arg9[%c0_129, %c0_130], %223 {strides = array<i32>} : memref<8x64xf32, #tpu.memory_space<vmem>>, vector<8x64xf32>,
    } else {
    }
    %c0 = arith.constant 0 : index
    %c0_1 = arith.constant 0 : index
    %3 = vector.load %arg3[%c0, %c0_1] : memref<8x64xf32, #tpu.memory_space<vmem>>, vector<8x64xf32>
    %cst = arith.constant 0.353553385 : f32
    %4 = vector.broadcast %cst : f32 to vector<8x64xf32>
    %5 = arith.mulf %3, %4 : vector<8x64xf32>
    %c0_2 = arith.constant 0 : index
    %c0_3 = arith.constant 0 : index
    %6 = vector.load %arg4[%c0_2, %c0_3] : memref<8x64xf32, #tpu.memory_space<vmem>>, vector<8x64xf32>
    %c0_4 = arith.constant 0 : index
    %c0_5 = arith.constant 0 : index
    %7 = vector.load %arg5[%c0_4, %c0_5] : memref<8x64xf32, #tpu.memory_space<vmem>>, vector<8x64xf32>
    %8 = vector.extract_strided_slice %5 {offsets = [0, 0], sizes = [8, 8], strides = [1, 1]} : vector<8x64xf32> to vector<8x8xf32>
    %9 = vector.extract_strided_slice %6 {offsets = [0, 0], sizes = [8, 8], strides = [1, 1]} : vector<8x64xf32> to vector<8x8xf32>
    %cst_6 = arith.constant dense<0.000000e+00> : vector<8x8xf32>
    %10 = tpu.matmul %8, %9, %cst_6 {dimension_numbers = #tpu.dot_dimension_numbers<[1], [1], [0], [0], [0, 0, 1, 0], [], []>} : vector<8x8xf32>, vector<8x8xf32>, vector<8x8xf32> -> vector<8x8xf32>
    %c0_7 = arith.constant 0 : index
    %c0_8 = arith.constant 0 : index
    %11 = vector.load %arg7[%c0_7, %c0_8] : memref<8x8xf32, #tpu.memory_space<vmem>>, vector<8x1xf32>
    %cst_9 = arith.constant dense<0xFF800000> : vector<8xf32>
    %12 = vector.multi_reduction <maximumf>, %10, %cst_9 [1] : vector<8x8xf32> to vector<8xf32>
    %13 = vector.shape_cast %12 : vector<8xf32> to vector<8x1xf32>
    %14 = arith.maximumf %11, %13 : vector<8x1xf32>
    %15 = arith.subf %11, %14 : vector<8x1xf32>
    %16 = math.exp %15 : vector<8x1xf32>
    %17 = vector.broadcast %14 : vector<8x1xf32> to vector<8x8xf32>
    %18 = arith.subf %10, %17 : vector<8x8xf32>
    %19 = math.exp %18 : vector<8x8xf32>
    %c0_10 = arith.constant 0 : index
    %c0_11 = arith.constant 0 : index
    %20 = vector.load %arg8[%c0_10, %c0_11] : memref<8x8xf32, #tpu.memory_space<vmem>>, vector<8x1xf32>
    %21 = arith.mulf %16, %20 : vector<8x1xf32>
    %cst_12 = arith.constant dense<0.000000e+00> : vector<8xf32>
    %22 = vector.multi_reduction <add>, %19, %cst_12 [1] : vector<8x8xf32> to vector<8xf32>
    %23 = vector.shape_cast %22 : vector<8xf32> to vector<8x1xf32>
    %24 = arith.addf %21, %23 : vector<8x1xf32>
    %c0_13 = arith.constant 0 : index
    %c0_14 = arith.constant 0 : index
    %25 = vector.load %arg8[%c0_13, %c0_14] : memref<8x8xf32, #tpu.memory_space<vmem>>, vector<8x1xf32>
    tpu.vector_store %arg8[%c0_13, %c0_14], %24 {strides = array<i32>} : memref<8x8xf32, #tpu.memory_space<vmem>>, vector<8x1xf32>,
    %c0_15 = arith.constant 0 : index
    %c0_16 = arith.constant 0 : index
    %26 = vector.load %arg9[%c0_15, %c0_16] : memref<8x64xf32, #tpu.memory_space<vmem>>, vector<8x8xf32>
    %27 = vector.broadcast %16 : vector<8x1xf32> to vector<8x8xf32>
    %28 = arith.mulf %27, %26 : vector<8x8xf32>
    %29 = vector.extract_strided_slice %7 {offsets = [0, 0], sizes = [8, 8], strides = [1, 1]} : vector<8x64xf32> to vector<8x8xf32>
    %cst_17 = arith.constant dense<0.000000e+00> : vector<8x8xf32>
    %30 = tpu.matmul %19, %29, %cst_17 {dimension_numbers = #tpu.dot_dimension_numbers<[1], [0], [0], [1], [0, 0, 1, 1], [], []>} : vector<8x8xf32>, vector<8x8xf32>, vector<8x8xf32> -> vector<8x8xf32>
    %31 = arith.addf %28, %30 : vector<8x8xf32>
    %c0_18 = arith.constant 0 : index
    %c0_19 = arith.constant 0 : index
    %32 = vector.load %arg9[%c0_18, %c0_19] : memref<8x64xf32, #tpu.memory_space<vmem>>, vector<8x8xf32>
    tpu.vector_store %arg9[%c0_18, %c0_19], %31 {strides = array<i32>} : memref<8x64xf32, #tpu.memory_space<vmem>>, vector<8x8xf32>,
    %c0_20 = arith.constant 0 : index
    %c0_21 = arith.constant 0 : index
    %33 = vector.load %arg7[%c0_20, %c0_21] : memref<8x8xf32, #tpu.memory_space<vmem>>, vector<8x1xf32>
    tpu.vector_store %arg7[%c0_20, %c0_21], %14 {strides = array<i32>} : memref<8x8xf32, #tpu.memory_space<vmem>>, vector<8x1xf32>,
    %34 = vector.extract_strided_slice %5 {offsets = [0, 8], sizes = [8, 8], strides = [1, 1]} : vector<8x64xf32> to vector<8x8xf32>
    %35 = vector.extract_strided_slice %6 {offsets = [0, 8], sizes = [8, 8], strides = [1, 1]} : vector<8x64xf32> to vector<8x8xf32>
    %cst_22 = arith.constant dense<0.000000e+00> : vector<8x8xf32>
    %36 = tpu.matmul %34, %35, %cst_22 {dimension_numbers = #tpu.dot_dimension_numbers<[1], [1], [0], [0], [0, 0, 1, 0], [], []>} : vector<8x8xf32>, vector<8x8xf32>, vector<8x8xf32> -> vector<8x8xf32>
    %c0_23 = arith.constant 0 : index
    %c1 = arith.constant 1 : index
    %37 = vector.load %arg7[%c0_23, %c1] : memref<8x8xf32, #tpu.memory_space<vmem>>, vector<8x1xf32>
    %cst_24 = arith.constant dense<0xFF800000> : vector<8xf32>
    %38 = vector.multi_reduction <maximumf>, %36, %cst_24 [1] : vector<8x8xf32> to vector<8xf32>
    %39 = vector.shape_cast %38 : vector<8xf32> to vector<8x1xf32>
    %40 = arith.maximumf %37, %39 : vector<8x1xf32>
    %41 = arith.subf %37, %40 : vector<8x1xf32>
    %42 = math.exp %41 : vector<8x1xf32>
    %43 = vector.broadcast %40 : vector<8x1xf32> to vector<8x8xf32>
    %44 = arith.subf %36, %43 : vector<8x8xf32>
    %45 = math.exp %44 : vector<8x8xf32>
    %c0_25 = arith.constant 0 : index
    %c1_26 = arith.constant 1 : index
    %46 = vector.load %arg8[%c0_25, %c1_26] : memref<8x8xf32, #tpu.memory_space<vmem>>, vector<8x1xf32>
    %47 = arith.mulf %42, %46 : vector<8x1xf32>
    %cst_27 = arith.constant dense<0.000000e+00> : vector<8xf32>
    %48 = vector.multi_reduction <add>, %45, %cst_27 [1] : vector<8x8xf32> to vector<8xf32>
    %49 = vector.shape_cast %48 : vector<8xf32> to vector<8x1xf32>
    %50 = arith.addf %47, %49 : vector<8x1xf32>
    %c0_28 = arith.constant 0 : index
    %c1_29 = arith.constant 1 : index
    %51 = vector.load %arg8[%c0_28, %c1_29] : memref<8x8xf32, #tpu.memory_space<vmem>>, vector<8x1xf32>
    tpu.vector_store %arg8[%c0_28, %c1_29], %50 {strides = array<i32>} : memref<8x8xf32, #tpu.memory_space<vmem>>, vector<8x1xf32>,
    %c0_30 = arith.constant 0 : index
    %c8 = arith.constant 8 : index
    %52 = vector.load %arg9[%c0_30, %c8] : memref<8x64xf32, #tpu.memory_space<vmem>>, vector<8x8xf32>
    %53 = vector.broadcast %42 : vector<8x1xf32> to vector<8x8xf32>
    %54 = arith.mulf %53, %52 : vector<8x8xf32>
    %55 = vector.extract_strided_slice %7 {offsets = [0, 8], sizes = [8, 8], strides = [1, 1]} : vector<8x64xf32> to vector<8x8xf32>
    %cst_31 = arith.constant dense<0.000000e+00> : vector<8x8xf32>
    %56 = tpu.matmul %45, %55, %cst_31 {dimension_numbers = #tpu.dot_dimension_numbers<[1], [0], [0], [1], [0, 0, 1, 1], [], []>} : vector<8x8xf32>, vector<8x8xf32>, vector<8x8xf32> -> vector<8x8xf32>
    %57 = arith.addf %54, %56 : vector<8x8xf32>
    %c0_32 = arith.constant 0 : index
    %c8_33 = arith.constant 8 : index
    %58 = vector.load %arg9[%c0_32, %c8_33] : memref<8x64xf32, #tpu.memory_space<vmem>>, vector<8x8xf32>
    tpu.vector_store %arg9[%c0_32, %c8_33], %57 {strides = array<i32>} : memref<8x64xf32, #tpu.memory_space<vmem>>, vector<8x8xf32>,
    %c0_34 = arith.constant 0 : index
    %c1_35 = arith.constant 1 : index
    %59 = vector.load %arg7[%c0_34, %c1_35] : memref<8x8xf32, #tpu.memory_space<vmem>>, vector<8x1xf32>
    tpu.vector_store %arg7[%c0_34, %c1_35], %40 {strides = array<i32>} : memref<8x8xf32, #tpu.memory_space<vmem>>, vector<8x1xf32>,
    %60 = vector.extract_strided_slice %5 {offsets = [0, 16], sizes = [8, 8], strides = [1, 1]} : vector<8x64xf32> to vector<8x8xf32>
    %61 = vector.extract_strided_slice %6 {offsets = [0, 16], sizes = [8, 8], strides = [1, 1]} : vector<8x64xf32> to vector<8x8xf32>
    %cst_36 = arith.constant dense<0.000000e+00> : vector<8x8xf32>
    %62 = tpu.matmul %60, %61, %cst_36 {dimension_numbers = #tpu.dot_dimension_numbers<[1], [1], [0], [0], [0, 0, 1, 0], [], []>} : vector<8x8xf32>, vector<8x8xf32>, vector<8x8xf32> -> vector<8x8xf32>
    %c0_37 = arith.constant 0 : index
    %c2 = arith.constant 2 : index
    %63 = vector.load %arg7[%c0_37, %c2] : memref<8x8xf32, #tpu.memory_space<vmem>>, vector<8x1xf32>
    %cst_38 = arith.constant dense<0xFF800000> : vector<8xf32>
    %64 = vector.multi_reduction <maximumf>, %62, %cst_38 [1] : vector<8x8xf32> to vector<8xf32>
    %65 = vector.shape_cast %64 : vector<8xf32> to vector<8x1xf32>
    %66 = arith.maximumf %63, %65 : vector<8x1xf32>
    %67 = arith.subf %63, %66 : vector<8x1xf32>
    %68 = math.exp %67 : vector<8x1xf32>
    %69 = vector.broadcast %66 : vector<8x1xf32> to vector<8x8xf32>
    %70 = arith.subf %62, %69 : vector<8x8xf32>
    %71 = math.exp %70 : vector<8x8xf32>
    %c0_39 = arith.constant 0 : index
    %c2_40 = arith.constant 2 : index
    %72 = vector.load %arg8[%c0_39, %c2_40] : memref<8x8xf32, #tpu.memory_space<vmem>>, vector<8x1xf32>
    %73 = arith.mulf %68, %72 : vector<8x1xf32>
    %cst_41 = arith.constant dense<0.000000e+00> : vector<8xf32>
    %74 = vector.multi_reduction <add>, %71, %cst_41 [1] : vector<8x8xf32> to vector<8xf32>
    %75 = vector.shape_cast %74 : vector<8xf32> to vector<8x1xf32>
    %76 = arith.addf %73, %75 : vector<8x1xf32>
    %c0_42 = arith.constant 0 : index
    %c2_43 = arith.constant 2 : index
    %77 = vector.load %arg8[%c0_42, %c2_43] : memref<8x8xf32, #tpu.memory_space<vmem>>, vector<8x1xf32>
    tpu.vector_store %arg8[%c0_42, %c2_43], %76 {strides = array<i32>} : memref<8x8xf32, #tpu.memory_space<vmem>>, vector<8x1xf32>,
    %c0_44 = arith.constant 0 : index
    %c16 = arith.constant 16 : index
    %78 = vector.load %arg9[%c0_44, %c16] : memref<8x64xf32, #tpu.memory_space<vmem>>, vector<8x8xf32>
    %79 = vector.broadcast %68 : vector<8x1xf32> to vector<8x8xf32>
    %80 = arith.mulf %79, %78 : vector<8x8xf32>
    %81 = vector.extract_strided_slice %7 {offsets = [0, 16], sizes = [8, 8], strides = [1, 1]} : vector<8x64xf32> to vector<8x8xf32>
    %cst_45 = arith.constant dense<0.000000e+00> : vector<8x8xf32>
    %82 = tpu.matmul %71, %81, %cst_45 {dimension_numbers = #tpu.dot_dimension_numbers<[1], [0], [0], [1], [0, 0, 1, 1], [], []>} : vector<8x8xf32>, vector<8x8xf32>, vector<8x8xf32> -> vector<8x8xf32>
    %83 = arith.addf %80, %82 : vector<8x8xf32>
    %c0_46 = arith.constant 0 : index
    %c16_47 = arith.constant 16 : index
    %84 = vector.load %arg9[%c0_46, %c16_47] : memref<8x64xf32, #tpu.memory_space<vmem>>, vector<8x8xf32>
    tpu.vector_store %arg9[%c0_46, %c16_47], %83 {strides = array<i32>} : memref<8x64xf32, #tpu.memory_space<vmem>>, vector<8x8xf32>,
    %c0_48 = arith.constant 0 : index
    %c2_49 = arith.constant 2 : index
    %85 = vector.load %arg7[%c0_48, %c2_49] : memref<8x8xf32, #tpu.memory_space<vmem>>, vector<8x1xf32>
    tpu.vector_store %arg7[%c0_48, %c2_49], %66 {strides = array<i32>} : memref<8x8xf32, #tpu.memory_space<vmem>>, vector<8x1xf32>,
    %86 = vector.extract_strided_slice %5 {offsets = [0, 24], sizes = [8, 8], strides = [1, 1]} : vector<8x64xf32> to vector<8x8xf32>
    %87 = vector.extract_strided_slice %6 {offsets = [0, 24], sizes = [8, 8], strides = [1, 1]} : vector<8x64xf32> to vector<8x8xf32>
    %cst_50 = arith.constant dense<0.000000e+00> : vector<8x8xf32>
    %88 = tpu.matmul %86, %87, %cst_50 {dimension_numbers = #tpu.dot_dimension_numbers<[1], [1], [0], [0], [0, 0, 1, 0], [], []>} : vector<8x8xf32>, vector<8x8xf32>, vector<8x8xf32> -> vector<8x8xf32>
    %c0_51 = arith.constant 0 : index
    %c3 = arith.constant 3 : index
    %89 = vector.load %arg7[%c0_51, %c3] : memref<8x8xf32, #tpu.memory_space<vmem>>, vector<8x1xf32>
    %cst_52 = arith.constant dense<0xFF800000> : vector<8xf32>
    %90 = vector.multi_reduction <maximumf>, %88, %cst_52 [1] : vector<8x8xf32> to vector<8xf32>
    %91 = vector.shape_cast %90 : vector<8xf32> to vector<8x1xf32>
    %92 = arith.maximumf %89, %91 : vector<8x1xf32>
    %93 = arith.subf %89, %92 : vector<8x1xf32>
    %94 = math.exp %93 : vector<8x1xf32>
    %95 = vector.broadcast %92 : vector<8x1xf32> to vector<8x8xf32>
    %96 = arith.subf %88, %95 : vector<8x8xf32>
    %97 = math.exp %96 : vector<8x8xf32>
    %c0_53 = arith.constant 0 : index
    %c3_54 = arith.constant 3 : index
    %98 = vector.load %arg8[%c0_53, %c3_54] : memref<8x8xf32, #tpu.memory_space<vmem>>, vector<8x1xf32>
    %99 = arith.mulf %94, %98 : vector<8x1xf32>
    %cst_55 = arith.constant dense<0.000000e+00> : vector<8xf32>
    %100 = vector.multi_reduction <add>, %97, %cst_55 [1] : vector<8x8xf32> to vector<8xf32>
    %101 = vector.shape_cast %100 : vector<8xf32> to vector<8x1xf32>
    %102 = arith.addf %99, %101 : vector<8x1xf32>
    %c0_56 = arith.constant 0 : index
    %c3_57 = arith.constant 3 : index
    %103 = vector.load %arg8[%c0_56, %c3_57] : memref<8x8xf32, #tpu.memory_space<vmem>>, vector<8x1xf32>
    tpu.vector_store %arg8[%c0_56, %c3_57], %102 {strides = array<i32>} : memref<8x8xf32, #tpu.memory_space<vmem>>, vector<8x1xf32>,
    %c0_58 = arith.constant 0 : index
    %c24 = arith.constant 24 : index
    %104 = vector.load %arg9[%c0_58, %c24] : memref<8x64xf32, #tpu.memory_space<vmem>>, vector<8x8xf32>
    %105 = vector.broadcast %94 : vector<8x1xf32> to vector<8x8xf32>
    %106 = arith.mulf %105, %104 : vector<8x8xf32>
    %107 = vector.extract_strided_slice %7 {offsets = [0, 24], sizes = [8, 8], strides = [1, 1]} : vector<8x64xf32> to vector<8x8xf32>
    %cst_59 = arith.constant dense<0.000000e+00> : vector<8x8xf32>
    %108 = tpu.matmul %97, %107, %cst_59 {dimension_numbers = #tpu.dot_dimension_numbers<[1], [0], [0], [1], [0, 0, 1, 1], [], []>} : vector<8x8xf32>, vector<8x8xf32>, vector<8x8xf32> -> vector<8x8xf32>
    %109 = arith.addf %106, %108 : vector<8x8xf32>
    %c0_60 = arith.constant 0 : index
    %c24_61 = arith.constant 24 : index
    %110 = vector.load %arg9[%c0_60, %c24_61] : memref<8x64xf32, #tpu.memory_space<vmem>>, vector<8x8xf32>
    tpu.vector_store %arg9[%c0_60, %c24_61], %109 {strides = array<i32>} : memref<8x64xf32, #tpu.memory_space<vmem>>, vector<8x8xf32>,
    %c0_62 = arith.constant 0 : index
    %c3_63 = arith.constant 3 : index
    %111 = vector.load %arg7[%c0_62, %c3_63] : memref<8x8xf32, #tpu.memory_space<vmem>>, vector<8x1xf32>
    tpu.vector_store %arg7[%c0_62, %c3_63], %92 {strides = array<i32>} : memref<8x8xf32, #tpu.memory_space<vmem>>, vector<8x1xf32>,
    %112 = vector.extract_strided_slice %5 {offsets = [0, 32], sizes = [8, 8], strides = [1, 1]} : vector<8x64xf32> to vector<8x8xf32>
    %113 = vector.extract_strided_slice %6 {offsets = [0, 32], sizes = [8, 8], strides = [1, 1]} : vector<8x64xf32> to vector<8x8xf32>
    %cst_64 = arith.constant dense<0.000000e+00> : vector<8x8xf32>
    %114 = tpu.matmul %112, %113, %cst_64 {dimension_numbers = #tpu.dot_dimension_numbers<[1], [1], [0], [0], [0, 0, 1, 0], [], []>} : vector<8x8xf32>, vector<8x8xf32>, vector<8x8xf32> -> vector<8x8xf32>
    %c0_65 = arith.constant 0 : index
    %c4 = arith.constant 4 : index
    %115 = vector.load %arg7[%c0_65, %c4] : memref<8x8xf32, #tpu.memory_space<vmem>>, vector<8x1xf32>
    %cst_66 = arith.constant dense<0xFF800000> : vector<8xf32>
    %116 = vector.multi_reduction <maximumf>, %114, %cst_66 [1] : vector<8x8xf32> to vector<8xf32>
    %117 = vector.shape_cast %116 : vector<8xf32> to vector<8x1xf32>
    %118 = arith.maximumf %115, %117 : vector<8x1xf32>
    %119 = arith.subf %115, %118 : vector<8x1xf32>
    %120 = math.exp %119 : vector<8x1xf32>
    %121 = vector.broadcast %118 : vector<8x1xf32> to vector<8x8xf32>
    %122 = arith.subf %114, %121 : vector<8x8xf32>
    %123 = math.exp %122 : vector<8x8xf32>
    %c0_67 = arith.constant 0 : index
    %c4_68 = arith.constant 4 : index
    %124 = vector.load %arg8[%c0_67, %c4_68] : memref<8x8xf32, #tpu.memory_space<vmem>>, vector<8x1xf32>
    %125 = arith.mulf %120, %124 : vector<8x1xf32>
    %cst_69 = arith.constant dense<0.000000e+00> : vector<8xf32>
    %126 = vector.multi_reduction <add>, %123, %cst_69 [1] : vector<8x8xf32> to vector<8xf32>
    %127 = vector.shape_cast %126 : vector<8xf32> to vector<8x1xf32>
    %128 = arith.addf %125, %127 : vector<8x1xf32>
    %c0_70 = arith.constant 0 : index
    %c4_71 = arith.constant 4 : index
    %129 = vector.load %arg8[%c0_70, %c4_71] : memref<8x8xf32, #tpu.memory_space<vmem>>, vector<8x1xf32>
    tpu.vector_store %arg8[%c0_70, %c4_71], %128 {strides = array<i32>} : memref<8x8xf32, #tpu.memory_space<vmem>>, vector<8x1xf32>,
    %c0_72 = arith.constant 0 : index
    %c32 = arith.constant 32 : index
    %130 = vector.load %arg9[%c0_72, %c32] : memref<8x64xf32, #tpu.memory_space<vmem>>, vector<8x8xf32>
    %131 = vector.broadcast %120 : vector<8x1xf32> to vector<8x8xf32>
    %132 = arith.mulf %131, %130 : vector<8x8xf32>
    %133 = vector.extract_strided_slice %7 {offsets = [0, 32], sizes = [8, 8], strides = [1, 1]} : vector<8x64xf32> to vector<8x8xf32>
    %cst_73 = arith.constant dense<0.000000e+00> : vector<8x8xf32>
    %134 = tpu.matmul %123, %133, %cst_73 {dimension_numbers = #tpu.dot_dimension_numbers<[1], [0], [0], [1], [0, 0, 1, 1], [], []>} : vector<8x8xf32>, vector<8x8xf32>, vector<8x8xf32> -> vector<8x8xf32>
    %135 = arith.addf %132, %134 : vector<8x8xf32>
    %c0_74 = arith.constant 0 : index
    %c32_75 = arith.constant 32 : index
    %136 = vector.load %arg9[%c0_74, %c32_75] : memref<8x64xf32, #tpu.memory_space<vmem>>, vector<8x8xf32>
    tpu.vector_store %arg9[%c0_74, %c32_75], %135 {strides = array<i32>} : memref<8x64xf32, #tpu.memory_space<vmem>>, vector<8x8xf32>,
    %c0_76 = arith.constant 0 : index
    %c4_77 = arith.constant 4 : index
    %137 = vector.load %arg7[%c0_76, %c4_77] : memref<8x8xf32, #tpu.memory_space<vmem>>, vector<8x1xf32>
    tpu.vector_store %arg7[%c0_76, %c4_77], %118 {strides = array<i32>} : memref<8x8xf32, #tpu.memory_space<vmem>>, vector<8x1xf32>,
    %138 = vector.extract_strided_slice %5 {offsets = [0, 40], sizes = [8, 8], strides = [1, 1]} : vector<8x64xf32> to vector<8x8xf32>
    %139 = vector.extract_strided_slice %6 {offsets = [0, 40], sizes = [8, 8], strides = [1, 1]} : vector<8x64xf32> to vector<8x8xf32>
    %cst_78 = arith.constant dense<0.000000e+00> : vector<8x8xf32>
    %140 = tpu.matmul %138, %139, %cst_78 {dimension_numbers = #tpu.dot_dimension_numbers<[1], [1], [0], [0], [0, 0, 1, 0], [], []>} : vector<8x8xf32>, vector<8x8xf32>, vector<8x8xf32> -> vector<8x8xf32>
    %c0_79 = arith.constant 0 : index
    %c5 = arith.constant 5 : index
    %141 = vector.load %arg7[%c0_79, %c5] : memref<8x8xf32, #tpu.memory_space<vmem>>, vector<8x1xf32>
    %cst_80 = arith.constant dense<0xFF800000> : vector<8xf32>
    %142 = vector.multi_reduction <maximumf>, %140, %cst_80 [1] : vector<8x8xf32> to vector<8xf32>
    %143 = vector.shape_cast %142 : vector<8xf32> to vector<8x1xf32>
    %144 = arith.maximumf %141, %143 : vector<8x1xf32>
    %145 = arith.subf %141, %144 : vector<8x1xf32>
    %146 = math.exp %145 : vector<8x1xf32>
    %147 = vector.broadcast %144 : vector<8x1xf32> to vector<8x8xf32>
    %148 = arith.subf %140, %147 : vector<8x8xf32>
    %149 = math.exp %148 : vector<8x8xf32>
    %c0_81 = arith.constant 0 : index
    %c5_82 = arith.constant 5 : index
    %150 = vector.load %arg8[%c0_81, %c5_82] : memref<8x8xf32, #tpu.memory_space<vmem>>, vector<8x1xf32>
    %151 = arith.mulf %146, %150 : vector<8x1xf32>
    %cst_83 = arith.constant dense<0.000000e+00> : vector<8xf32>
    %152 = vector.multi_reduction <add>, %149, %cst_83 [1] : vector<8x8xf32> to vector<8xf32>
    %153 = vector.shape_cast %152 : vector<8xf32> to vector<8x1xf32>
    %154 = arith.addf %151, %153 : vector<8x1xf32>
    %c0_84 = arith.constant 0 : index
    %c5_85 = arith.constant 5 : index
    %155 = vector.load %arg8[%c0_84, %c5_85] : memref<8x8xf32, #tpu.memory_space<vmem>>, vector<8x1xf32>
    tpu.vector_store %arg8[%c0_84, %c5_85], %154 {strides = array<i32>} : memref<8x8xf32, #tpu.memory_space<vmem>>, vector<8x1xf32>,
    %c0_86 = arith.constant 0 : index
    %c40 = arith.constant 40 : index
    %156 = vector.load %arg9[%c0_86, %c40] : memref<8x64xf32, #tpu.memory_space<vmem>>, vector<8x8xf32>
    %157 = vector.broadcast %146 : vector<8x1xf32> to vector<8x8xf32>
    %158 = arith.mulf %157, %156 : vector<8x8xf32>
    %159 = vector.extract_strided_slice %7 {offsets = [0, 40], sizes = [8, 8], strides = [1, 1]} : vector<8x64xf32> to vector<8x8xf32>
    %cst_87 = arith.constant dense<0.000000e+00> : vector<8x8xf32>
    %160 = tpu.matmul %149, %159, %cst_87 {dimension_numbers = #tpu.dot_dimension_numbers<[1], [0], [0], [1], [0, 0, 1, 1], [], []>} : vector<8x8xf32>, vector<8x8xf32>, vector<8x8xf32> -> vector<8x8xf32>
    %161 = arith.addf %158, %160 : vector<8x8xf32>
    %c0_88 = arith.constant 0 : index
    %c40_89 = arith.constant 40 : index
    %162 = vector.load %arg9[%c0_88, %c40_89] : memref<8x64xf32, #tpu.memory_space<vmem>>, vector<8x8xf32>
    tpu.vector_store %arg9[%c0_88, %c40_89], %161 {strides = array<i32>} : memref<8x64xf32, #tpu.memory_space<vmem>>, vector<8x8xf32>,
    %c0_90 = arith.constant 0 : index
    %c5_91 = arith.constant 5 : index
    %163 = vector.load %arg7[%c0_90, %c5_91] : memref<8x8xf32, #tpu.memory_space<vmem>>, vector<8x1xf32>
    tpu.vector_store %arg7[%c0_90, %c5_91], %144 {strides = array<i32>} : memref<8x8xf32, #tpu.memory_space<vmem>>, vector<8x1xf32>,
    %164 = vector.extract_strided_slice %5 {offsets = [0, 48], sizes = [8, 8], strides = [1, 1]} : vector<8x64xf32> to vector<8x8xf32>
    %165 = vector.extract_strided_slice %6 {offsets = [0, 48], sizes = [8, 8], strides = [1, 1]} : vector<8x64xf32> to vector<8x8xf32>
    %cst_92 = arith.constant dense<0.000000e+00> : vector<8x8xf32>
    %166 = tpu.matmul %164, %165, %cst_92 {dimension_numbers = #tpu.dot_dimension_numbers<[1], [1], [0], [0], [0, 0, 1, 0], [], []>} : vector<8x8xf32>, vector<8x8xf32>, vector<8x8xf32> -> vector<8x8xf32>
    %c0_93 = arith.constant 0 : index
    %c6 = arith.constant 6 : index
    %167 = vector.load %arg7[%c0_93, %c6] : memref<8x8xf32, #tpu.memory_space<vmem>>, vector<8x1xf32>
    %cst_94 = arith.constant dense<0xFF800000> : vector<8xf32>
    %168 = vector.multi_reduction <maximumf>, %166, %cst_94 [1] : vector<8x8xf32> to vector<8xf32>
    %169 = vector.shape_cast %168 : vector<8xf32> to vector<8x1xf32>
    %170 = arith.maximumf %167, %169 : vector<8x1xf32>
    %171 = arith.subf %167, %170 : vector<8x1xf32>
    %172 = math.exp %171 : vector<8x1xf32>
    %173 = vector.broadcast %170 : vector<8x1xf32> to vector<8x8xf32>
    %174 = arith.subf %166, %173 : vector<8x8xf32>
    %175 = math.exp %174 : vector<8x8xf32>
    %c0_95 = arith.constant 0 : index
    %c6_96 = arith.constant 6 : index
    %176 = vector.load %arg8[%c0_95, %c6_96] : memref<8x8xf32, #tpu.memory_space<vmem>>, vector<8x1xf32>
    %177 = arith.mulf %172, %176 : vector<8x1xf32>
    %cst_97 = arith.constant dense<0.000000e+00> : vector<8xf32>
    %178 = vector.multi_reduction <add>, %175, %cst_97 [1] : vector<8x8xf32> to vector<8xf32>
    %179 = vector.shape_cast %178 : vector<8xf32> to vector<8x1xf32>
    %180 = arith.addf %177, %179 : vector<8x1xf32>
    %c0_98 = arith.constant 0 : index
    %c6_99 = arith.constant 6 : index
    %181 = vector.load %arg8[%c0_98, %c6_99] : memref<8x8xf32, #tpu.memory_space<vmem>>, vector<8x1xf32>
    tpu.vector_store %arg8[%c0_98, %c6_99], %180 {strides = array<i32>} : memref<8x8xf32, #tpu.memory_space<vmem>>, vector<8x1xf32>,
    %c0_100 = arith.constant 0 : index
    %c48 = arith.constant 48 : index
    %182 = vector.load %arg9[%c0_100, %c48] : memref<8x64xf32, #tpu.memory_space<vmem>>, vector<8x8xf32>
    %183 = vector.broadcast %172 : vector<8x1xf32> to vector<8x8xf32>
    %184 = arith.mulf %183, %182 : vector<8x8xf32>
    %185 = vector.extract_strided_slice %7 {offsets = [0, 48], sizes = [8, 8], strides = [1, 1]} : vector<8x64xf32> to vector<8x8xf32>
    %cst_101 = arith.constant dense<0.000000e+00> : vector<8x8xf32>
    %186 = tpu.matmul %175, %185, %cst_101 {dimension_numbers = #tpu.dot_dimension_numbers<[1], [0], [0], [1], [0, 0, 1, 1], [], []>} : vector<8x8xf32>, vector<8x8xf32>, vector<8x8xf32> -> vector<8x8xf32>
    %187 = arith.addf %184, %186 : vector<8x8xf32>
    %c0_102 = arith.constant 0 : index
    %c48_103 = arith.constant 48 : index
    %188 = vector.load %arg9[%c0_102, %c48_103] : memref<8x64xf32, #tpu.memory_space<vmem>>, vector<8x8xf32>
    tpu.vector_store %arg9[%c0_102, %c48_103], %187 {strides = array<i32>} : memref<8x64xf32, #tpu.memory_space<vmem>>, vector<8x8xf32>,
    %c0_104 = arith.constant 0 : index
    %c6_105 = arith.constant 6 : index
    %189 = vector.load %arg7[%c0_104, %c6_105] : memref<8x8xf32, #tpu.memory_space<vmem>>, vector<8x1xf32>
    tpu.vector_store %arg7[%c0_104, %c6_105], %170 {strides = array<i32>} : memref<8x8xf32, #tpu.memory_space<vmem>>, vector<8x1xf32>,
    %190 = vector.extract_strided_slice %5 {offsets = [0, 56], sizes = [8, 8], strides = [1, 1]} : vector<8x64xf32> to vector<8x8xf32>
    %191 = vector.extract_strided_slice %6 {offsets = [0, 56], sizes = [8, 8], strides = [1, 1]} : vector<8x64xf32> to vector<8x8xf32>
    %cst_106 = arith.constant dense<0.000000e+00> : vector<8x8xf32>
    %192 = tpu.matmul %190, %191, %cst_106 {dimension_numbers = #tpu.dot_dimension_numbers<[1], [1], [0], [0], [0, 0, 1, 0], [], []>} : vector<8x8xf32>, vector<8x8xf32>, vector<8x8xf32> -> vector<8x8xf32>
    %c0_107 = arith.constant 0 : index
    %c7 = arith.constant 7 : index
    %193 = vector.load %arg7[%c0_107, %c7] : memref<8x8xf32, #tpu.memory_space<vmem>>, vector<8x1xf32>
    %cst_108 = arith.constant dense<0xFF800000> : vector<8xf32>
    %194 = vector.multi_reduction <maximumf>, %192, %cst_108 [1] : vector<8x8xf32> to vector<8xf32>
    %195 = vector.shape_cast %194 : vector<8xf32> to vector<8x1xf32>
    %196 = arith.maximumf %193, %195 : vector<8x1xf32>
    %197 = arith.subf %193, %196 : vector<8x1xf32>
    %198 = math.exp %197 : vector<8x1xf32>
    %199 = vector.broadcast %196 : vector<8x1xf32> to vector<8x8xf32>
    %200 = arith.subf %192, %199 : vector<8x8xf32>
    %201 = math.exp %200 : vector<8x8xf32>
    %c0_109 = arith.constant 0 : index
    %c7_110 = arith.constant 7 : index
    %202 = vector.load %arg8[%c0_109, %c7_110] : memref<8x8xf32, #tpu.memory_space<vmem>>, vector<8x1xf32>
    %203 = arith.mulf %198, %202 : vector<8x1xf32>
    %cst_111 = arith.constant dense<0.000000e+00> : vector<8xf32>
    %204 = vector.multi_reduction <add>, %201, %cst_111 [1] : vector<8x8xf32> to vector<8xf32>
    %205 = vector.shape_cast %204 : vector<8xf32> to vector<8x1xf32>
    %206 = arith.addf %203, %205 : vector<8x1xf32>
    %c0_112 = arith.constant 0 : index
    %c7_113 = arith.constant 7 : index
    %207 = vector.load %arg8[%c0_112, %c7_113] : memref<8x8xf32, #tpu.memory_space<vmem>>, vector<8x1xf32>
    tpu.vector_store %arg8[%c0_112, %c7_113], %206 {strides = array<i32>} : memref<8x8xf32, #tpu.memory_space<vmem>>, vector<8x1xf32>,
    %c0_114 = arith.constant 0 : index
    %c56 = arith.constant 56 : index
    %208 = vector.load %arg9[%c0_114, %c56] : memref<8x64xf32, #tpu.memory_space<vmem>>, vector<8x8xf32>
    %209 = vector.broadcast %198 : vector<8x1xf32> to vector<8x8xf32>
    %210 = arith.mulf %209, %208 : vector<8x8xf32>
    %211 = vector.extract_strided_slice %7 {offsets = [0, 56], sizes = [8, 8], strides = [1, 1]} : vector<8x64xf32> to vector<8x8xf32>
    %cst_115 = arith.constant dense<0.000000e+00> : vector<8x8xf32>
    %212 = tpu.matmul %201, %211, %cst_115 {dimension_numbers = #tpu.dot_dimension_numbers<[1], [0], [0], [1], [0, 0, 1, 1], [], []>} : vector<8x8xf32>, vector<8x8xf32>, vector<8x8xf32> -> vector<8x8xf32>
    %213 = arith.addf %210, %212 : vector<8x8xf32>
    %c0_116 = arith.constant 0 : index
    %c56_117 = arith.constant 56 : index
    %214 = vector.load %arg9[%c0_116, %c56_117] : memref<8x64xf32, #tpu.memory_space<vmem>>, vector<8x8xf32>
    tpu.vector_store %arg9[%c0_116, %c56_117], %213 {strides = array<i32>} : memref<8x64xf32, #tpu.memory_space<vmem>>, vector<8x8xf32>,
    %c0_118 = arith.constant 0 : index
    %c7_119 = arith.constant 7 : index
    %215 = vector.load %arg7[%c0_118, %c7_119] : memref<8x8xf32, #tpu.memory_space<vmem>>, vector<8x1xf32>
    tpu.vector_store %arg7[%c0_118, %c7_119], %196 {strides = array<i32>} : memref<8x8xf32, #tpu.memory_space<vmem>>, vector<8x1xf32>,
    %c0_i32_120 = arith.constant 0 : i32
    %216 = arith.cmpi eq, %arg2, %c0_i32_120 : i32
    %217 = arith.extui %216 : i1 to i32
    %c0_i32_121 = arith.constant 0 : i32
    %218 = arith.cmpi ne, %217, %c0_i32_121 : i32
    scf.if %218 {
      %c0_122 = arith.constant 0 : index
      %c0_123 = arith.constant 0 : index
      %219 = vector.load %arg8[%c0_122, %c0_123] : memref<8x8xf32, #tpu.memory_space<vmem>>, vector<8x1xf32>
      %220 = tpu.reciprocal %219 {approx = true} : vector<8x1xf32> -> vector<8x1xf32>
      %221 = arith.mulf %219, %220 : vector<8x1xf32>
      %cst_124 = arith.constant 2.000000e+00 : f32
      %222 = vector.broadcast %cst_124 : f32 to vector<8x1xf32>
      %223 = arith.subf %222, %221 : vector<8x1xf32>
      %224 = arith.mulf %220, %223 : vector<8x1xf32>
      %c0_125 = arith.constant 0 : index
      %c0_126 = arith.constant 0 : index
      %225 = vector.load %arg9[%c0_125, %c0_126] : memref<8x64xf32, #tpu.memory_space<vmem>>, vector<8x8xf32>
      %226 = vector.broadcast %224 : vector<8x1xf32> to vector<8x8xf32>
      %227 = arith.mulf %225, %226 : vector<8x8xf32>
      %c0_127 = arith.constant 0 : index
      %c0_128 = arith.constant 0 : index
      %228 = vector.load %arg6[%c0_127, %c0_128] : memref<8x64xf32, #tpu.memory_space<vmem>>, vector<8x8xf32>
      tpu.vector_store %arg6[%c0_127, %c0_128], %227 {strides = array<i32>} : memref<8x64xf32, #tpu.memory_space<vmem>>, vector<8x8xf32>,
      %c0_129 = arith.constant 0 : index
      %c1_130 = arith.constant 1 : index
      %229 = vector.load %arg8[%c0_129, %c1_130] : memref<8x8xf32, #tpu.memory_space<vmem>>, vector<8x1xf32>
      %230 = tpu.reciprocal %229 {approx = true} : vector<8x1xf32> -> vector<8x1xf32>
      %231 = arith.mulf %229, %230 : vector<8x1xf32>
      %cst_131 = arith.constant 2.000000e+00 : f32
      %232 = vector.broadcast %cst_131 : f32 to vector<8x1xf32>
      %233 = arith.subf %232, %231 : vector<8x1xf32>
      %234 = arith.mulf %230, %233 : vector<8x1xf32>
      %c0_132 = arith.constant 0 : index
      %c8_133 = arith.constant 8 : index
      %235 = vector.load %arg9[%c0_132, %c8_133] : memref<8x64xf32, #tpu.memory_space<vmem>>, vector<8x8xf32>
      %236 = vector.broadcast %234 : vector<8x1xf32> to vector<8x8xf32>
      %237 = arith.mulf %235, %236 : vector<8x8xf32>
      %c0_134 = arith.constant 0 : index
      %c8_135 = arith.constant 8 : index
      %238 = vector.load %arg6[%c0_134, %c8_135] : memref<8x64xf32, #tpu.memory_space<vmem>>, vector<8x8xf32>
      tpu.vector_store %arg6[%c0_134, %c8_135], %237 {strides = array<i32>} : memref<8x64xf32, #tpu.memory_space<vmem>>, vector<8x8xf32>,
      %c0_136 = arith.constant 0 : index
      %c2_137 = arith.constant 2 : index
      %239 = vector.load %arg8[%c0_136, %c2_137] : memref<8x8xf32, #tpu.memory_space<vmem>>, vector<8x1xf32>
      %240 = tpu.reciprocal %239 {approx = true} : vector<8x1xf32> -> vector<8x1xf32>
      %241 = arith.mulf %239, %240 : vector<8x1xf32>
      %cst_138 = arith.constant 2.000000e+00 : f32
      %242 = vector.broadcast %cst_138 : f32 to vector<8x1xf32>
      %243 = arith.subf %242, %241 : vector<8x1xf32>
      %244 = arith.mulf %240, %243 : vector<8x1xf32>
      %c0_139 = arith.constant 0 : index
      %c16_140 = arith.constant 16 : index
      %245 = vector.load %arg9[%c0_139, %c16_140] : memref<8x64xf32, #tpu.memory_space<vmem>>, vector<8x8xf32>
      %246 = vector.broadcast %244 : vector<8x1xf32> to vector<8x8xf32>
      %247 = arith.mulf %245, %246 : vector<8x8xf32>
      %c0_141 = arith.constant 0 : index
      %c16_142 = arith.constant 16 : index
      %248 = vector.load %arg6[%c0_141, %c16_142] : memref<8x64xf32, #tpu.memory_space<vmem>>, vector<8x8xf32>
      tpu.vector_store %arg6[%c0_141, %c16_142], %247 {strides = array<i32>} : memref<8x64xf32, #tpu.memory_space<vmem>>, vector<8x8xf32>,
      %c0_143 = arith.constant 0 : index
      %c3_144 = arith.constant 3 : index
      %249 = vector.load %arg8[%c0_143, %c3_144] : memref<8x8xf32, #tpu.memory_space<vmem>>, vector<8x1xf32>
      %250 = tpu.reciprocal %249 {approx = true} : vector<8x1xf32> -> vector<8x1xf32>
      %251 = arith.mulf %249, %250 : vector<8x1xf32>
      %cst_145 = arith.constant 2.000000e+00 : f32
      %252 = vector.broadcast %cst_145 : f32 to vector<8x1xf32>
      %253 = arith.subf %252, %251 : vector<8x1xf32>
      %254 = arith.mulf %250, %253 : vector<8x1xf32>
      %c0_146 = arith.constant 0 : index
      %c24_147 = arith.constant 24 : index
      %255 = vector.load %arg9[%c0_146, %c24_147] : memref<8x64xf32, #tpu.memory_space<vmem>>, vector<8x8xf32>
      %256 = vector.broadcast %254 : vector<8x1xf32> to vector<8x8xf32>
      %257 = arith.mulf %255, %256 : vector<8x8xf32>
      %c0_148 = arith.constant 0 : index
      %c24_149 = arith.constant 24 : index
      %258 = vector.load %arg6[%c0_148, %c24_149] : memref<8x64xf32, #tpu.memory_space<vmem>>, vector<8x8xf32>
      tpu.vector_store %arg6[%c0_148, %c24_149], %257 {strides = array<i32>} : memref<8x64xf32, #tpu.memory_space<vmem>>, vector<8x8xf32>,
      %c0_150 = arith.constant 0 : index
      %c4_151 = arith.constant 4 : index
      %259 = vector.load %arg8[%c0_150, %c4_151] : memref<8x8xf32, #tpu.memory_space<vmem>>, vector<8x1xf32>
      %260 = tpu.reciprocal %259 {approx = true} : vector<8x1xf32> -> vector<8x1xf32>
      %261 = arith.mulf %259, %260 : vector<8x1xf32>
      %cst_152 = arith.constant 2.000000e+00 : f32
      %262 = vector.broadcast %cst_152 : f32 to vector<8x1xf32>
      %263 = arith.subf %262, %261 : vector<8x1xf32>
      %264 = arith.mulf %260, %263 : vector<8x1xf32>
      %c0_153 = arith.constant 0 : index
      %c32_154 = arith.constant 32 : index
      %265 = vector.load %arg9[%c0_153, %c32_154] : memref<8x64xf32, #tpu.memory_space<vmem>>, vector<8x8xf32>
      %266 = vector.broadcast %264 : vector<8x1xf32> to vector<8x8xf32>
      %267 = arith.mulf %265, %266 : vector<8x8xf32>
      %c0_155 = arith.constant 0 : index
      %c32_156 = arith.constant 32 : index
      %268 = vector.load %arg6[%c0_155, %c32_156] : memref<8x64xf32, #tpu.memory_space<vmem>>, vector<8x8xf32>
      tpu.vector_store %arg6[%c0_155, %c32_156], %267 {strides = array<i32>} : memref<8x64xf32, #tpu.memory_space<vmem>>, vector<8x8xf32>,
      %c0_157 = arith.constant 0 : index
      %c5_158 = arith.constant 5 : index
      %269 = vector.load %arg8[%c0_157, %c5_158] : memref<8x8xf32, #tpu.memory_space<vmem>>, vector<8x1xf32>
      %270 = tpu.reciprocal %269 {approx = true} : vector<8x1xf32> -> vector<8x1xf32>
      %271 = arith.mulf %269, %270 : vector<8x1xf32>
      %cst_159 = arith.constant 2.000000e+00 : f32
      %272 = vector.broadcast %cst_159 : f32 to vector<8x1xf32>
      %273 = arith.subf %272, %271 : vector<8x1xf32>
      %274 = arith.mulf %270, %273 : vector<8x1xf32>
      %c0_160 = arith.constant 0 : index
      %c40_161 = arith.constant 40 : index
      %275 = vector.load %arg9[%c0_160, %c40_161] : memref<8x64xf32, #tpu.memory_space<vmem>>, vector<8x8xf32>
      %276 = vector.broadcast %274 : vector<8x1xf32> to vector<8x8xf32>
      %277 = arith.mulf %275, %276 : vector<8x8xf32>
      %c0_162 = arith.constant 0 : index
      %c40_163 = arith.constant 40 : index
      %278 = vector.load %arg6[%c0_162, %c40_163] : memref<8x64xf32, #tpu.memory_space<vmem>>, vector<8x8xf32>
      tpu.vector_store %arg6[%c0_162, %c40_163], %277 {strides = array<i32>} : memref<8x64xf32, #tpu.memory_space<vmem>>, vector<8x8xf32>,
      %c0_164 = arith.constant 0 : index
      %c6_165 = arith.constant 6 : index
      %279 = vector.load %arg8[%c0_164, %c6_165] : memref<8x8xf32, #tpu.memory_space<vmem>>, vector<8x1xf32>
      %280 = tpu.reciprocal %279 {approx = true} : vector<8x1xf32> -> vector<8x1xf32>
      %281 = arith.mulf %279, %280 : vector<8x1xf32>
      %cst_166 = arith.constant 2.000000e+00 : f32
      %282 = vector.broadcast %cst_166 : f32 to vector<8x1xf32>
      %283 = arith.subf %282, %281 : vector<8x1xf32>
      %284 = arith.mulf %280, %283 : vector<8x1xf32>
      %c0_167 = arith.constant 0 : index
      %c48_168 = arith.constant 48 : index
      %285 = vector.load %arg9[%c0_167, %c48_168] : memref<8x64xf32, #tpu.memory_space<vmem>>, vector<8x8xf32>
      %286 = vector.broadcast %284 : vector<8x1xf32> to vector<8x8xf32>
      %287 = arith.mulf %285, %286 : vector<8x8xf32>
      %c0_169 = arith.constant 0 : index
      %c48_170 = arith.constant 48 : index
      %288 = vector.load %arg6[%c0_169, %c48_170] : memref<8x64xf32, #tpu.memory_space<vmem>>, vector<8x8xf32>
      tpu.vector_store %arg6[%c0_169, %c48_170], %287 {strides = array<i32>} : memref<8x64xf32, #tpu.memory_space<vmem>>, vector<8x8xf32>,
      %c0_171 = arith.constant 0 : index
      %c7_172 = arith.constant 7 : index
      %289 = vector.load %arg8[%c0_171, %c7_172] : memref<8x8xf32, #tpu.memory_space<vmem>>, vector<8x1xf32>
      %290 = tpu.reciprocal %289 {approx = true} : vector<8x1xf32> -> vector<8x1xf32>
      %291 = arith.mulf %289, %290 : vector<8x1xf32>
      %cst_173 = arith.constant 2.000000e+00 : f32
      %292 = vector.broadcast %cst_173 : f32 to vector<8x1xf32>
      %293 = arith.subf %292, %291 : vector<8x1xf32>
      %294 = arith.mulf %290, %293 : vector<8x1xf32>
      %c0_174 = arith.constant 0 : index
      %c56_175 = arith.constant 56 : index
      %295 = vector.load %arg9[%c0_174, %c56_175] : memref<8x64xf32, #tpu.memory_space<vmem>>, vector<8x8xf32>
      %296 = vector.broadcast %294 : vector<8x1xf32> to vector<8x8xf32>
      %297 = arith.mulf %295, %296 : vector<8x8xf32>
      %c0_176 = arith.constant 0 : index
      %c56_177 = arith.constant 56 : index
      %298 = vector.load %arg6[%c0_176, %c56_177] : memref<8x64xf32, #tpu.memory_space<vmem>>, vector<8x8xf32>
      tpu.vector_store %arg6[%c0_176, %c56_177], %297 {strides = array<i32>} : memref<8x64xf32, #tpu.memory_space<vmem>>, vector<8x8xf32>,
    } else {
    }
    return
  }
  func.func @transform_0(%arg0: i32, %arg1: i32, %arg2: i32) -> (i32, i32) {
    %c0_i32 = arith.constant 0 : i32
    return %arg1, %arg0 : i32, i32
  }
  func.func @transform_1(%arg0: i32, %arg1: i32, %arg2: i32) -> (i32, i32) {
    %c0_i32 = arith.constant 0 : i32
    return %arg2, %arg0 : i32, i32
  }
  func.func @transform_2(%arg0: i32, %arg1: i32, %arg2: i32) -> (i32, i32) {
    %c0_i32 = arith.constant 0 : i32
    return %arg2, %arg0 : i32, i32
  }
  func.func @transform_3(%arg0: i32, %arg1: i32, %arg2: i32) -> (i32, i32) {
    %c0_i32 = arith.constant 0 : i32
    return %arg1, %arg0 : i32, i32
  }
}

module attributes {stable_mosaic.version = 11 : i64} {
  func.func @_linear_kernel(%arg0: i32, %arg1: i32, %arg2: i32, %arg3: i32, %arg4: memref<1x16x32xf32, #tpu.memory_space<vmem>>, %arg5: memref<1x32x32xf32, #tpu.memory_space<vmem>>, %arg6: memref<1x1x32xf32, #tpu.memory_space<vmem>>, %arg7: memref<1x16x32xf32, #tpu.memory_space<vmem>>, %arg8: memref<16x32xf32, #tpu.memory_space<vmem>>) attributes {dimension_semantics = [#tpu.dimension_semantics<parallel>, #tpu.dimension_semantics<parallel>, #tpu.dimension_semantics<parallel>, #tpu.dimension_semantics<arbitrary>], iteration_bounds = array<i64: 1, 1, 1, 1>, scalar_prefetch = 0 : i64, scratch_operands = 1 : i64, tpu.core_type = #tpu.core_type<tc>, window_params = [{transform_indices = @transform_0, window_bounds = array<i64: 1, 16, 32>}, {transform_indices = @transform_1, window_bounds = array<i64: 1, 32, 32>}, {transform_indices = @transform_2, window_bounds = array<i64: 1, 1, 32>}, {transform_indices = @transform_3, window_bounds = array<i64: 1, 16, 32>}]} {
    %c0_i32 = arith.constant 0 : i32
    %0 = arith.cmpi eq, %arg3, %c0_i32 : i32
    %1 = arith.extui %0 : i1 to i32
    %c0_i32_0 = arith.constant 0 : i32
    %2 = arith.cmpi ne, %1, %c0_i32_0 : i32
    scf.if %2 {
      %cst_12 = arith.constant 0.000000e+00 : f32
      %14 = vector.broadcast %cst_12 : f32 to vector<16x32xf32>
      %c0_13 = arith.constant 0 : index
      %c0_14 = arith.constant 0 : index
      %15 = vector.load %arg8[%c0_13, %c0_14] : memref<16x32xf32, #tpu.memory_space<vmem>>, vector<16x32xf32>
      tpu.vector_store %arg8[%c0_13, %c0_14], %14 {strides = array<i32>} : memref<16x32xf32, #tpu.memory_space<vmem>>, vector<16x32xf32>,
    } else {
    }
    %c0 = arith.constant 0 : index
    %c0_1 = arith.constant 0 : index
    %3 = vector.load %arg8[%c0, %c0_1] : memref<16x32xf32, #tpu.memory_space<vmem>>, vector<16x32xf32>
    %c0_2 = arith.constant 0 : index
    %c0_3 = arith.constant 0 : index
    %c0_4 = arith.constant 0 : index
    %4 = vector.load %arg4[%c0_2, %c0_3, %c0_4] : memref<1x16x32xf32, #tpu.memory_space<vmem>>, vector<1x16x32xf32>
    %5 = vector.shape_cast %4 : vector<1x16x32xf32> to vector<16x32xf32>
    %c0_5 = arith.constant 0 : index
    %c0_6 = arith.constant 0 : index
    %c0_7 = arith.constant 0 : index
    %6 = vector.load %arg5[%c0_5, %c0_6, %c0_7] : memref<1x32x32xf32, #tpu.memory_space<vmem>>, vector<1x32x32xf32>
    %7 = vector.shape_cast %6 : vector<1x32x32xf32> to vector<32x32xf32>
    %cst = arith.constant dense<0.000000e+00> : vector<16x32xf32>
    %8 = tpu.matmul %5, %7, %cst {dimension_numbers = #tpu.dot_dimension_numbers<[1], [0], [0], [1], [0, 0, 1, 1], [], []>} : vector<16x32xf32>, vector<32x32xf32>, vector<16x32xf32> -> vector<16x32xf32>
    %9 = arith.addf %3, %8 : vector<16x32xf32>
    %c0_8 = arith.constant 0 : index
    %c0_9 = arith.constant 0 : index
    %10 = vector.load %arg8[%c0_8, %c0_9] : memref<16x32xf32, #tpu.memory_space<vmem>>, vector<16x32xf32>
    tpu.vector_store %arg8[%c0_8, %c0_9], %9 {strides = array<i32>} : memref<16x32xf32, #tpu.memory_space<vmem>>, vector<16x32xf32>,
    %c0_i32_10 = arith.constant 0 : i32
    %11 = arith.cmpi eq, %arg3, %c0_i32_10 : i32
    %12 = arith.extui %11 : i1 to i32
    %c0_i32_11 = arith.constant 0 : i32
    %13 = arith.cmpi ne, %12, %c0_i32_11 : i32
    scf.if %13 {
      %c0_12 = arith.constant 0 : index
      %c0_13 = arith.constant 0 : index
      %14 = vector.load %arg8[%c0_12, %c0_13] : memref<16x32xf32, #tpu.memory_space<vmem>>, vector<16x32xf32>
      %c0_14 = arith.constant 0 : index
      %c0_15 = arith.constant 0 : index
      %c0_16 = arith.constant 0 : index
      %15 = vector.load %arg6[%c0_14, %c0_15, %c0_16] : memref<1x1x32xf32, #tpu.memory_space<vmem>>, vector<1x1x32xf32>
      %16 = vector.shape_cast %15 : vector<1x1x32xf32> to vector<1x32xf32>
      %17 = vector.broadcast %16 : vector<1x32xf32> to vector<16x32xf32>
      %18 = arith.addf %14, %17 : vector<16x32xf32>
      %c0_17 = arith.constant 0 : index
      %c0_18 = arith.constant 0 : index
      %c0_19 = arith.constant 0 : index
      %19 = vector.load %arg7[%c0_17, %c0_18, %c0_19] : memref<1x16x32xf32, #tpu.memory_space<vmem>>, vector<1x16x32xf32>
      %20 = vector.shape_cast %19 : vector<1x16x32xf32> to vector<16x32xf32>
      %21 = vector.shape_cast %18 : vector<16x32xf32> to vector<1x16x32xf32>
      tpu.vector_store %arg7[%c0_17, %c0_18, %c0_19], %21 {strides = array<i32>} : memref<1x16x32xf32, #tpu.memory_space<vmem>>, vector<1x16x32xf32>,
    } else {
    }
    return
  }
  func.func @transform_0(%arg0: i32, %arg1: i32, %arg2: i32, %arg3: i32) -> (i32, i32, i32) {
    %c0_i32 = arith.constant 0 : i32
    return %arg2, %arg0, %arg3 : i32, i32, i32
  }
  func.func @transform_1(%arg0: i32, %arg1: i32, %arg2: i32, %arg3: i32) -> (i32, i32, i32) {
    %c0_i32 = arith.constant 0 : i32
    return %arg2, %arg3, %arg1 : i32, i32, i32
  }
  func.func @transform_2(%arg0: i32, %arg1: i32, %arg2: i32, %arg3: i32) -> (i32, i32, i32) {
    %c0_i32 = arith.constant 0 : i32
    %c0_i32_0 = arith.constant 0 : i32
    return %arg2, %c0_i32, %arg1 : i32, i32, i32
  }
  func.func @transform_3(%arg0: i32, %arg1: i32, %arg2: i32, %arg3: i32) -> (i32, i32, i32) {
    %c0_i32 = arith.constant 0 : i32
    return %arg2, %arg0, %arg1 : i32, i32, i32
  }
}

</mosaic_0001>

<bundles_post_ra>
// kernel: squeeze.6
= control target key start
LH: loop header
LB: loop body
LE: loop exit
PB: predicated region body
PF: predicated region fallthrough
CT: control target
= control target key end

     0   :  { %vm3_vm0 = vcmask 261120   ;;  %s13_s11 = smov 32   ;;  %vm9_vm1 = vcmask 523520   ;;  %s36_s0 = inlined_call_operand.vmem [shape: f32[1,16,32], index: 0, kind: input, shape index: {}]   ;;  %s37_s1 = inlined_call_operand.vmem [shape: f32[8,64], index: 1, kind: output, shape index: {}]  }
   0x1   :  { %v2_v0 = vld [vmem:[%s36_s0] ss:$2 sm:$0xff]   ;;  %v11_v1 = vld [vmem:[%s36_s0 + $0x1] ss:$2 sm:$0xff]  }
   0x2   :  { %4 = vst.msk [vmem:[%s37_s1] sm:$0xff] %vm3_vm0, %v2_v0   ;;  %7 = vrot.lane.b32.xlu0 %v11_v1, %s13_s11 }
  0x74   :  { %v8_v2 = vpop.permute.xlu0 %7  }
  0x75   :  { %10 = vst.msk [vmem:[%s37_s1] sm:$0xff] %vm9_vm1, %v8_v2  }

// kernel: multi_head_attention.5
= control target key start
LH: loop header
LB: loop body
LE: loop exit
PB: predicated region body
PF: predicated region fallthrough
CT: control target
= control target key end

     0   :  { %vm19_vm0 = vcmask 261120   ;;  %v132_v2 = vmov 0.0   ;;  %s188_s0 = inlined_call_operand.vmem [shape: f32[1,16,32], index: 0, kind: input, shape index: {}]   ;;  %s189_s1 = inlined_call_operand.vmem [shape: f32[1,32,32], index: 1, kind: input, shape index: {}]   ;;  %s190_s2 = inlined_call_operand.vmem [shape: f32[1,1,32], index: 2, kind: input, shape index: {}]   ;;  %s191_s3 = inlined_call_operand.hbm [shape: f32[1,16,32], index: 3, kind: output, shape index: {}]  }
   0x1   :  { %v29_v0 = vld [vmem:[%s189_s1 + $0x18] sm:$0xff]  ;;  %v28_v1 = vld [vmem:[%s189_s1 + $0x10] sm:$0xff]  ;;  %20 = vst.msk [vmem:[#allocation2] sm:$0xff] %vm19_vm0, %v132_v2  ;;  %v27_v3 = vld [vmem:[%s189_s1 + $0x8] sm:$0xff] }
   0x2   :  { %49 = vmatpush.msra.mxu0 %v29_v0  ;;  %97 = vmatpush.msra.mxu1 %v29_v0  ;;  %21 = vst.msk [vmem:[#allocation2 + $0x8] sm:$0xff] %vm19_vm0, %v132_v2 }
   0x3   :  { %8 = vsyncpa [#allocation4], 0  ;;  %v26_v4 = vld [vmem:[%s189_s1] sm:$0xff]  ;;  %v25_v6 = vld [vmem:[%s188_s0 + $0x8] sm:$0xff]  ;;  %s83_s28 = sshll.u32 %s191_s3, 4  ;;  %s134_s29 = smov 128   ;;  %s84_s28 = int_to_ptr.hbm [resolvable:$true] %s83_s28 }
   0x4   :  { %50 = vmatpush.msra.mxu0 %v28_v1  ;;  %98 = vmatpush.msra.mxu1 %v28_v1  ;;  %v24_v5 = vld [vmem:[%s188_s0] sm:$0xff]  ;;  %s133_s0 = smov [#allocation3]   ;;  %s135_s30 = smov 8  }
   0x5   :  { %v105_v13 = vld [vmem:[%s190_s2] ss:$0 sm:$0xff]  ;;  %s81_s25 = sshll.u32 %s133_s0, 4  ;;  %s82_s25 = int_to_ptr.vmem [resolvable:$true] %s81_s25 }
   0x6   :  { %51 = vmatpush.msra.mxu0 %v27_v3  ;;  %99 = vmatpush.msra.mxu1 %v27_v3 }
   0x8   :  { %52 = vmatpush.msra.mxu0 %v26_v4  ;;  %100 = vmatpush.msra.mxu1 %v26_v4  ;;  %v22_v7 = vld [vmem:[#allocation2] sm:$0xff] }
   0x9   :  { %95 = vmatmul.msk.f32.vlgmr.msra.gmra.mxu0 %vm19_vm0, %v24_v5  ;;  %96 = vmatmul.msk.f32.vlgmr.msra.gmra.mxu1 %vm19_vm0, %v25_v6  ;;  %v23_v8 = vld [vmem:[#allocation2 + $0x8] sm:$0xff] }
  0x86   :  { %v54_v9 = vpop.f32.mrf.mxu0  ;;  %v57_v10 = vpop.f32.mrf.mxu1 }
  0x87   :  { %v60_v11 = vadd.f32 %v54_v9, %v22_v7  ;;  %v61_v12 = vadd.f32 %v57_v10, %v23_v8 }
  0x89   :  { %62 = vst.msk [vmem:[#allocation2] sm:$0xff] %vm19_vm0, %v60_v11 }
  0x8a   :  { %63 = vst.msk [vmem:[#allocation2 + $0x8] sm:$0xff] %vm19_vm0, %v61_v12 }
  0x90   :  { %v67_v14 = vld [vmem:[#allocation2] sm:$0xff] }
  0x91   :  { %v68_v15 = vld [vmem:[#allocation2 + $0x8] sm:$0xff]  ;;  %v73_v16 = vadd.f32 %v105_v13, %v67_v14 }
  0x92   :  { %v74_v17 = vadd.f32 %v105_v13, %v68_v15 }
  0x93   :  { %75 = vst.msk [vmem:[#allocation3] sm:$0xff] %vm19_vm0, %v73_v16 }
  0x94   :  { %76 = vst.msk [vmem:[#allocation3 + $0x8] sm:$0xff] %vm19_vm0, %v74_v17 }
  0x95   :  { %89 = dma.vmem_to_hbm [thread:$0]  %s82_s25, 256, %s84_s28, [#allocation4], %s134_s29, %s134_s29, %s135_s30  }
  0x96   :  { %130 = dma.done.wait [#allocation4], 256  }
  0x97   :  { %131 = vsyncadd [#allocation4], 4294967040 }
  0x98   :  { %94 = vsyncpa [#allocation4], 1 }

// kernel: multi_head_attention.3
= control target key start
LH: loop header
LB: loop body
LE: loop exit
PB: predicated region body
PF: predicated region fallthrough
CT: control target
= control target key end

     0   :  { %s609_s12 = smov 0   ;;  %s611_s13 = smov 0   ;;  %s661_s0 = inlined_call_operand.vmem [shape: f32[3,16,32], index: 0, kind: input, shape index: {}]   ;;  %s662_s1 = inlined_call_operand.vmem [shape: f32[3,32,32], index: 1, kind: input, shape index: {}]   ;;  %s663_s2 = inlined_call_operand.vmem [shape: f32[3,1,32], index: 2, kind: input, shape index: {}]   ;;  %s664_s3 = inlined_call_operand.vmem [shape: f32[3,16,32], index: 3, kind: output, shape index: {}]  }
   0x1   :  { %s613_s14 = smov 0  }
   0x2 LB: > { %s31_s15 = sadd.s32 1, %s582_s13  ;;  %p520_p0 = scmp.ge.s32.totalorder %s586_s14, 1  ;;  %s586_s14 = sphi %s613_s14, %s13_s14   ;;  %s582_s13 = sphi %s611_s13, %s666_s13   ;;  %s578_s12 = sphi %s609_s12, %s665_s12  }
   0x3   : > { %p33_p1 = scmp.ge.s32.totalorder %s31_s15, 3  ;;  %p214_p2 = scmp.lt.s32.totalorder %s586_s14, 4 }
   0x5   : > { %s668_s15 = smov (%p33_p1, %s31_s15), 0  ;;  %p215_p3 = pnand %p520_p0, %p214_p2 }
   0x6   : > { %p271_p4 = scmp.lt.s32.totalorder (!%p215_p3), %s578_s12, 2 }
   0x7   : > { %218 = sbr.rel (%p215_p3) target bundleno = 163 (0xa3), region = 32 }
   0xc   : > { %vm319_vm0 = vcmask 261120   ;;  %v588_v0 = vmov 0.0   ;;  %s670_s12 = smov (!%p271_p4, %s578_s12), 2 }
   0xd   : > { %320 = vst.msk [vmem:[#allocation2] sm:$0xff] %vm319_vm0, %v588_v0  ;;  %s532_s16 = sshll.u32 %s670_s12, 5  ;;  %s301_s19 = scalar_lea.vmem %s663_s2, %s670_s12 }
   0xe   : > { %321 = vst.msk [vmem:[#allocation2 + $0x8] sm:$0xff] %vm319_vm0, %v588_v0  ;;  %s294_s22 = scalar_lea.vmem %s662_s1, %s532_s16  ;;  %s531_s23 = sshll.u32 %s670_s12, 4  ;;  %v563_v13 = vld [vmem:[%s301_s19] ss:$0 sm:$0xff] }
   0xf   : > { %v329_v1 = vld [vmem:[%s294_s22 + $0x18] sm:$0xff]  ;;  %v328_v2 = vld [vmem:[%s294_s22 + $0x10] sm:$0xff]  ;;  %v327_v3 = vld [vmem:[%s294_s22 + $0x8] sm:$0xff]  ;;  %s281_s26 = scalar_lea.vmem %s661_s0, %s531_s23  ;;  %s313_s29 = scalar_lea.vmem %s664_s3, %s531_s23 }
  0x10   : > { %349 = vmatpush.msra.mxu0 %v329_v1  ;;  %534 = vmatpush.msra.mxu1 %v329_v1  ;;  %v326_v4 = vld [vmem:[%s294_s22] sm:$0xff]  ;;  %v325_v6 = vld [vmem:[%s281_s26 + $0x8] sm:$0xff] }
  0x11   : > { %v324_v5 = vld [vmem:[%s281_s26] sm:$0xff] }
  0x12   : > { %350 = vmatpush.msra.mxu0 %v328_v2  ;;  %535 = vmatpush.msra.mxu1 %v328_v2 }
  0x14   : > { %351 = vmatpush.msra.mxu0 %v327_v3  ;;  %536 = vmatpush.msra.mxu1 %v327_v3  ;;  %v322_v7 = vld [vmem:[#allocation2] sm:$0xff] }
  0x15   : > { %v323_v8 = vld [vmem:[#allocation2 + $0x8] sm:$0xff] }
  0x16   : > { %352 = vmatpush.msra.mxu0 %v326_v4  ;;  %537 = vmatpush.msra.mxu1 %v326_v4 }
  0x17   : > { %527 = vmatmul.msk.f32.vlgmr.msra.gmra.mxu0 %vm319_vm0, %v324_v5  ;;  %528 = vmatmul.msk.f32.vlgmr.msra.gmra.mxu1 %vm319_vm0, %v325_v6 }
  0x94   : > { %v354_v9 = vpop.f32.mrf.mxu0  ;;  %v357_v10 = vpop.f32.mrf.mxu1 }
  0x95   : > { %v360_v11 = vadd.f32 %v354_v9, %v322_v7  ;;  %v361_v12 = vadd.f32 %v357_v10, %v323_v8 }
  0x97   : > { %362 = vst.msk [vmem:[#allocation2] sm:$0xff] %vm319_vm0, %v360_v11 }
  0x98   : > { %363 = vst.msk [vmem:[#allocation2 + $0x8] sm:$0xff] %vm319_vm0, %v361_v12 }
  0x9e   : > { %v367_v14 = vld [vmem:[#allocation2] sm:$0xff] }
  0x9f   : > { %v373_v15 = vadd.f32 %v563_v13, %v367_v14  ;;  %v368_v16 = vld [vmem:[#allocation2 + $0x8] sm:$0xff] }
  0xa0   : > { %v374_v17 = vadd.f32 %v563_v13, %v368_v16 }
  0xa1   : > { %375 = vst.msk [vmem:[%s313_s29] sm:$0xff] %vm319_vm0, %v373_v15 }
  0xa2   : > { %376 = vst.msk [vmem:[%s313_s29 + $0x8] sm:$0xff] %vm319_vm0, %v374_v17 }
  0xa3 PF: > { %s13_s14 = sadd.s32 1, %s586_s14   ;;  %s665_s12 = smov %s582_s13 }
  0xa4   : > { %p10_p5 = scmp.ge.s32.totalorder %s13_s14, 5   ;;  %s666_s13 = smov %s668_s15 }
  0xa6   :  { %12 = sbr.rel (!%p10_p5) target bundleno = 2 (0x2), region = 76 }

// kernel: multi_head_attention.4
= control target key start
LH: loop header
LB: loop body
LE: loop exit
PB: predicated region body
PF: predicated region fallthrough
CT: control target
= control target key end

     0   :  { %vm18_vm0 = vcmask 64512   ;;  %s979_s16 = smov 120   ;;  %s980_s17 = smov 112   ;;  %v985_v7 = vmov -inf   ;;  %v986_v8 = vmov 0   ;;  %v987_v9 = vmov 0.0   ;;  %s1267_s1 = inlined_call_operand.vmem [shape: f32[8,64], index: 1, kind: input, shape index: {}]   ;;  %s1268_s0 = inlined_call_operand.vmem [shape: f32[8,64], index: 0, kind: input, shape index: {}]   ;;  %s1269_s2 = inlined_call_operand.vmem [shape: f32[8,64], index: 2, kind: input, shape index: {}]   ;;  %s1270_s3 = inlined_call_operand.vmem [shape: f32[8,64], index: 3, kind: output, shape index: {}]  }
   0x1   :  { %v25_v0 = vld [vmem:[%s1267_s1] sm:$0xff]  ;;  %s981_s1 = smov 96   ;;  %s982_s18 = smov 80   ;;  %19 = vst.msk [vmem:[#allocation2] sm:$0xff] %vm18_vm0, %v985_v7  ;;  %922 = vset.pattern.permute.xlu0 %v986_v8  ;;  %923 = vset.pattern.permute.xlu1 %v986_v8  ;;  %vm76_vm1 = vcmask 7168   ;;  %v989_v20 = vmov 1  }
   0x2   :  { %v23_v1 = vld [vmem:[%s1268_s0] sm:$0xff]  ;;  %113 = vrot.lane.b32.xlu2 %v25_v0, %s979_s16  ;;  %874 = vmatpush.xpose.msk.msra.mxu0 %vm18_vm0, %v25_v0  ;;  %s983_s0 = smov 72   ;;  %s984_s19 = smov 104   ;;  %20 = vst.msk [vmem:[#allocation3] sm:$0xff] %vm18_vm0, %v987_v9  ;;  %vm21_vm2 = vcmask 523264   ;;  %vm161_vm3 = vcmask 15368  }
   0x3   :  { %v24_v2 = vmul.f32 0.35355338, %v23_v1  ;;  %207 = vrot.lane.b32.xlu1 %v25_v0, %s980_s17  ;;  %v1056_v17 = vld [vmem:[%s1269_s2] sm:$0xff]  ;;  %s988_s22 = smov 88   ;;  %925 = vset.pattern.permute.xlu2 %v989_v20  ;;  %22 = vst.msk [vmem:[#allocation4] sm:$0xff] %vm21_vm2, %v987_v9  ;;  %s991_s2 = smov 8  }
   0x4   :  { %103 = vmatpush.msra.mxu1 %v1056_v17  ;;  %vm255_vm4 = vcmask 23568   ;;  %vm348_vm5 = vcmask 31768   ;;  %vm441_vm6 = vcmask 39968   ;;  %vm202_vm7 = vcmask 130112   ;;  %s997_s23 = smov 16   ;;  %s998_s24 = smov 24  }
   0x5   :  { %875 = vmatmul.msk.f32.vlgmr.msra.gmra.mxu0 %vm18_vm0, %v24_v2  ;;  %vm534_vm8 = vcmask 48168   ;;  %vm627_vm9 = vcmask 56368   ;;  %vm720_vm10 = vcmask 64568   ;;  %s999_s25 = smov 32   ;;  %vm295_vm11 = vcmask 195712   ;;  %s1000_s26 = smov 40  }
   0x6   :  { %vm388_vm12 = vcmask 261312   ;;  %vm481_vm13 = vcmask 326912   ;;  %s1001_s27 = smov 48   ;;  %s1002_s28 = smov 56   ;;  %vm574_vm14 = vcmask 392512   ;;  %vm667_vm15 = vcmask 458112  }
   0x8   :  { %v54_v12 = vld [vmem:[#allocation2] sm:$0xff] }
   0x9   :  { %v70_v50 = vld [vmem:[#allocation3] sm:$0xff] }
   0xa   :  { %111 = vrot.lane.b32.xlu2 %v24_v2, %s979_s16  ;;  %v78_v54 = vld [vmem:[#allocation4] sm:$0xff] }
   0xb   :  { %205 = vrot.lane.b32.xlu1 %v24_v2, %s980_s17 }
  0x12   :  { %391 = vrot.lane.b32.xlu2 %v24_v2, %s981_s1 }
  0x13   :  { %298 = vrot.lane.b32.xlu1 %v24_v2, %s984_s19 }
  0x1a   :  { %579 = vrot.lane.b32.xlu2 %v25_v0, %s982_s18 }
  0x1b   :  { %393 = vrot.lane.b32.xlu1 %v25_v0, %s981_s1 }
  0x22   :  { %672 = vrot.lane.b32.xlu2 %v25_v0, %s983_s0 }
  0x5c   :  { %v114_v3 = vpop.permute.xlu2 %113 }
  0x5d   :  { %877 = vmatpush.xpose.msk.msra.mxu2 %vm18_vm0, %v114_v3 }
  0x64   :  { %v112_v4 = vpop.permute.xlu2 %111 }
  0x65   :  { %878 = vmatmul.msk.f32.vlgmr.msra.gmra.mxu2 %vm18_vm0, %v112_v4  ;;  %v990_v4 = vmov 2  }
  0x6c   :  { %v392_v21 = vpop.permute.xlu2 %391 }
  0x74   :  { %v580_v22 = vpop.permute.xlu2 %579 }
  0x75   :  { %v208_v18 = vpop.permute.xlu1 %207 }
  0x76   :  { %880 = vmatpush.xpose.msk.msrb.mxu1 %vm18_vm0, %v208_v18 }
  0x7c   :  { %v673_v23 = vpop.permute.xlu2 %672 }
  0x7d   :  { %v206_v29 = vpop.permute.xlu1 %205 }
  0x82   :  { %v51_v5 = vpop.f32.mrf.mxu0 }
  0x83   :  { %v55_v6 = vsel %vm18_vm0, %v51_v5, -inf }
  0x84   :  { %56 = vmax.xlane.f32.xlu0 %v55_v6 }
  0x85   :  { %v299_v33 = vpop.permute.xlu1 %298 }
  0x8d   :  { %v394_v37 = vpop.permute.xlu1 %393 }
  0xe8   :  { %v1047_v10 = vpop.f32.mrf.mxu2 }
  0xe9   :  { %v140_v11 = vsel %vm18_vm0, %v1047_v10, -inf }
  0xea   :  { %141 = vmax.xlane.f32.xlu2 %v140_v11 }
  0xf7   :  { %v57_v13 = vpop.xlane.xlu0 %56 }
  0xf8   :  { %v58_v14 = vmax.f32 %v54_v12, %v57_v13 }
  0xfa   :  { %v59_v15 = vsub.f32 %v54_v12, %v58_v14  ;;  %110 = vst.msk [vmem:[#allocation2] sm:$0xff] %vm76_vm1, %v58_v14  ;;  %64 = vperm.xlu0 %922, %v58_v14  }
  0xfc   :  { %v60_v16 = vmul.f32 1.442695, %v59_v15  ;;  %v992_v15 = vmov 3  }
  0xfe   :  { %945 = vpow2.f32 %v60_v16 }
 0x101   :  { %v139_v25 = vld [vmem:[#allocation2] sm:$0xff] }
 0x102   :  { %300 = vrot.lane.b32.xlu0 %v25_v0, %s984_s19 }
 0x103   :  { %924 = vset.pattern.permute.xlu0 %v989_v20 }
 0x104   :  { %v1059_v19 = vpop.eup %945 }
 0x105   :  { %81 = vperm.xlu1 %923, %v1059_v19   ;;  %v71_v51 = vmul.f32 %v1059_v19, %v70_v50 }
 0x10a   :  { %486 = vrot.lane.b32.xlu0 %v25_v0, %s988_s22 }
 0x10d   :  { %928 = vset.pattern.permute.xlu1 %v990_v4 }
 0x112   :  { %484 = vrot.lane.b32.xlu0 %v24_v2, %s988_s22 }
 0x11a   :  { %577 = vrot.lane.b32.xlu0 %v24_v2, %s982_s18 }
 0x122   :  { %670 = vrot.lane.b32.xlu0 %v24_v2, %s983_s0 }
 0x12a   :  { %171 = vrot.lane.b32.xlu0 %v1056_v17, %s979_s16 }
 0x15d   :  { %v142_v24 = vpop.xlane.xlu2 %141 }
 0x15e   :  { %v143_v26 = vmax.f32 %v139_v25, %v142_v24 }
 0x160   :  { %v144_v27 = vsub.f32 %v139_v25, %v143_v26  ;;  %204 = vst.msk [vmem:[#allocation2] sm:$0xff] %vm161_vm3, %v143_v26  ;;  %149 = vperm.xlu0 %924, %v143_v26   ;;  %v993_v25 = vmov 4  }
 0x162   :  { %v145_v28 = vmul.f32 1.442695, %v144_v27 }
 0x164   :  { %947 = vpow2.f32 %v145_v28 }
 0x167   :  { %v233_v6 = vld [vmem:[#allocation2] sm:$0xff] }
 0x168   :  { %264 = vrot.lane.b32.xlu0 %v1056_v17, %s980_s17 }
 0x169   :  { %926 = vset.pattern.permute.xlu0 %v990_v4 }
 0x16a   :  { %v948_v30 = vpop.eup %947 }
 0x16b   :  { %166 = vperm.xlu2 %925, %v948_v30  }
 0x16c   :  { %v65_v31 = vpop.permute.xlu0 %64 }
 0x16d   :  { %v67_v32 = vsub.f32 %v51_v5, %v65_v31 }
 0x16f   :  { %v68_v34 = vmul.f32 1.442695, %v67_v32 }
 0x171   :  { %949 = vpow2.f32 %v68_v34 }
 0x174   :  { %v301_v35 = vpop.permute.xlu0 %300 }
 0x175   :  { %883 = vmatpush.xpose.msk.msrb.mxu0 %vm18_vm0, %v301_v35 }
 0x177   :  { %v950_v36 = vpop.eup %949  ;;  %v82_v49 = vpop.permute.xlu1 %81 }
 0x178   :  { %876 = vmatmul.msk.f32.vlgmr.msra.gmra.mxu1 %vm18_vm0, %v950_v36  ;;  %v72_v38 = vsel %vm18_vm0, %v950_v36, 0.0  ;;  %884 = vmatmul.msk.f32.vlgmr.msrb.gmra.mxu0 %vm18_vm0, %v299_v33  ;;  %v84_v55 = vmul.f32 %v82_v49, %v78_v54 }
 0x179   :  { %73 = vadd.xlane.f32.xlu1 %v72_v38  ;;  %886 = vmatpush.xpose.msk.msra.mxu1 %vm18_vm0, %v394_v37 }
 0x17c   :  { %v487_v39 = vpop.permute.xlu0 %486 }
 0x17d   :  { %889 = vmatpush.xpose.msk.msra.mxu0 %vm18_vm0, %v487_v39 }
 0x180   :  { %881 = vmatmul.msk.f32.vlgmr.msrb.gmra.mxu1 %vm18_vm0, %v206_v29 }
 0x181   :  { %895 = vmatpush.xpose.msk.msrb.mxu0 %vm18_vm0, %v673_v23  ;;  %892 = vmatpush.xpose.msk.msrb.mxu1 %vm18_vm0, %v580_v22 }
 0x184   :  { %v485_v40 = vpop.permute.xlu0 %484 }
 0x185   :  { %890 = vmatmul.msk.f32.vlgmr.msra.gmra.mxu0 %vm18_vm0, %v485_v40 }
 0x188   :  { %887 = vmatmul.msk.f32.vlgmr.msra.gmra.mxu1 %vm18_vm0, %v392_v21 }
 0x18c   :  { %v578_v41 = vpop.permute.xlu0 %577 }
 0x190   :  { %893 = vmatmul.msk.f32.vlgmr.msrb.gmra.mxu1 %vm18_vm0, %v578_v41 }
 0x194   :  { %v671_v42 = vpop.permute.xlu0 %670 }
 0x195   :  { %896 = vmatmul.msk.f32.vlgmr.msrb.gmra.mxu0 %vm18_vm0, %v671_v42 }
 0x19c   :  { %v172_v43 = vpop.permute.xlu0 %171 }
 0x19d   :  { %192 = vmatpush.msra.mxu3 %v172_v43 }
 0x1c5   :  { %v167_v16 = vpop.permute.xlu2 %166 }
 0x1d2   :  { %v150_v44 = vpop.permute.xlu0 %149 }
 0x1d3   :  { %v152_v45 = vsub.f32 %v1047_v10, %v150_v44 }
 0x1d5   :  { %v153_v46 = vmul.f32 1.442695, %v152_v45  ;;  %v994_v45 = vmov 5  }
 0x1d6   :  { %934 = vset.pattern.permute.xlu2 %v994_v45 }
 0x1d7   :  { %951 = vpow2.f32 %v153_v46 }
 0x1dd   :  { %v952_v47 = vpop.eup %951 }
 0x1de   :  { %879 = vmatmul.msk.f32.vlgmr.msra.gmra.mxu3 %vm18_vm0, %v952_v47  ;;  %v157_v48 = vsel %vm18_vm0, %v952_v47, 0.0 }
 0x1df   :  { %158 = vadd.xlane.f32.xlu1 %v157_v48  ;;  %v995_v48 = vmov 6  }
 0x1ec   :  { %v74_v52 = vpop.xlane.xlu1 %73 }
 0x1ed   :  { %v75_v53 = vadd.f32 %v74_v52, %v71_v51 }
 0x1ef   :  { %77 = vst.msk [vmem:[#allocation3] sm:$0xff] %vm76_vm1, %v75_v53  ;;  %vm760_vm1 = vcmask 523712  }
 0x1f5   :  { %v105_v56 = vpop.f32.mrf.mxu1  ;;  %v1097_v60 = vpop.f32.mrf.mxu0 }
 0x1f6   :  { %v108_v57 = vadd.f32 %v105_v56, %v84_v55  ;;  %v327_v61 = vsel %vm18_vm0, %v1097_v60, -inf  ;;  %v155_v0 = vld [vmem:[#allocation3] sm:$0xff] }
 0x1f7   :  { %v156_v1 = vmul.f32 %v948_v30, %v155_v0  ;;  %v265_v30 = vpop.permute.xlu0 %264 }
 0x1f8   :  { %109 = vst.msk [vmem:[#allocation4] sm:$0xff] %vm18_vm0, %v108_v57  ;;  %285 = vmatpush.msrb.mxu3 %v265_v30 }
 0x1fd   :  { %v1093_v58 = vpop.f32.mrf.mxu1 }
 0x1fe   :  { %v234_v59 = vsel %vm18_vm0, %v1093_v58, -inf }
 0x1ff   :  { %235 = vmax.xlane.f32.xlu1 %v234_v59  ;;  %v163_v31 = vld [vmem:[#allocation4] sm:$0xff] }
 0x200   :  { %v169_v32 = vmul.f32 %v167_v16, %v163_v31 }
 0x202   :  { %v1140_v28 = vpop.f32.mrf.mxu0 }
 0x203   :  { %v513_v29 = vsel %vm18_vm0, %v1140_v28, -inf }
 0x205   :  { %v1101_v62 = vpop.f32.mrf.mxu1 }
 0x206   :  { %v420_v63 = vsel %vm18_vm0, %v1101_v62, -inf }
 0x207   :  { %421 = vmax.xlane.f32.xlu2 %v420_v63  ;;  %328 = vmax.xlane.f32.xlu1 %v327_v61  ;;  %v996_v63 = vmov 7  }
 0x20d   :  { %v1125_v23 = vpop.f32.mrf.mxu1 }
 0x20e   :  { %v606_v27 = vsel %vm18_vm0, %v1125_v23, -inf }
 0x212   :  { %v1147_v35 = vpop.f32.mrf.mxu0 }
 0x213   :  { %v699_v36 = vsel %vm18_vm0, %v1147_v35, -inf }
 0x252   :  { %v159_v2 = vpop.xlane.xlu1 %158 }
 0x253   :  { %v160_v3 = vadd.f32 %v159_v2, %v156_v1 }
 0x255   :  { %162 = vst.msk [vmem:[#allocation3] sm:$0xff] %vm161_vm3, %v160_v3 }
 0x261   :  { %v194_v5 = vpop.f32.mrf.mxu3 }
 0x262   :  { %198 = vrot.lane.b32.xlu2 %v194_v5, %s991_s2 }
 0x272   :  { %v236_v7 = vpop.xlane.xlu1 %235 }
 0x273   :  { %v237_v9 = vmax.f32 %v233_v6, %v236_v7 }
 0x275   :  { %v238_v10 = vsub.f32 %v233_v6, %v237_v9  ;;  %297 = vst.msk [vmem:[#allocation2] sm:$0xff] %vm255_vm4, %v237_v9  ;;  %243 = vperm.xlu0 %926, %v237_v9  }
 0x277   :  { %v239_v11 = vmul.f32 1.442695, %v238_v10 }
 0x279   :  { %953 = vpow2.f32 %v239_v11 }
 0x27a   :  { %v329_v12 = vpop.xlane.xlu1 %328  ;;  %v422_v21 = vpop.xlane.xlu2 %421 }
 0x27c   :  { %v1109_v13 = vld [vmem:[#allocation2] sm:$0xff] }
 0x27d   :  { %v1112_v14 = vmax.f32 %v1109_v13, %v329_v12  ;;  %927 = vset.pattern.permute.xlu0 %v992_v15 }
 0x27f   :  { %v1115_v18 = vpop.eup %953  ;;  %v331_v19 = vsub.f32 %v1109_v13, %v1112_v14  ;;  %390 = vst.msk [vmem:[#allocation2] sm:$0xff] %vm348_vm5, %v1112_v14  ;;  %336 = vperm.xlu0 %927, %v1112_v14  }
 0x280   :  { %260 = vperm.xlu1 %928, %v1115_v18  }
 0x286   :  { %v1123_v22 = vld [vmem:[#allocation2] sm:$0xff] }
 0x287   :  { %v1128_v24 = vmax.f32 %v1123_v22, %v422_v21  ;;  %931 = vset.pattern.permute.xlu0 %v995_v48  ;;  %v332_v21 = vmul.f32 1.442695, %v331_v19 }
 0x288   :  { %929 = vset.pattern.permute.xlu1 %v993_v25 }
 0x289   :  { %429 = vperm.xlu1 %929, %v1128_v24   ;;  %v424_v26 = vsub.f32 %v1123_v22, %v1128_v24  ;;  %483 = vst.msk [vmem:[#allocation2] sm:$0xff] %vm441_vm6, %v1128_v24  ;;  %v249_v24 = vld [vmem:[#allocation3] sm:$0xff] }
 0x28b   :  { %607 = vmax.xlane.f32.xlu2 %v606_v27  ;;  %v425_v6 = vmul.f32 1.442695, %v424_v26  ;;  %v250_v26 = vmul.f32 %v1115_v18, %v249_v24 }
 0x290   :  { %v512_v53 = vld [vmem:[#allocation2] sm:$0xff] }
 0x291   :  { %930 = vset.pattern.permute.xlu1 %v994_v45 }
 0x2a3   :  { %357 = vrot.lane.b32.xlu2 %v1056_v17, %s984_s19 }
 0x2a9   :  { %514 = vmax.xlane.f32.xlu0 %v513_v29 }
 0x2bc   :  { %v199_v33 = vpop.permute.xlu2 %198 }
 0x2bd   :  { %v201_v34 = vadd.f32 %v199_v33, %v169_v32  ;;  %450 = vrot.lane.b32.xlu0 %v1056_v17, %s981_s1 }
 0x2bf   :  { %203 = vst.msk [vmem:[#allocation4] sm:$0xff] %vm202_vm7, %v201_v34 }
 0x2cc   :  { %700 = vmax.xlane.f32.xlu2 %v699_v36 }
 0x2e4   :  { %729 = vrot.lane.b32.xlu2 %v1056_v17, %s983_s0 }
 0x2e7   :  { %v244_v37 = vpop.permute.xlu0 %243 }
 0x2e8   :  { %v246_v38 = vsub.f32 %v1093_v58, %v244_v37 }
 0x2ea   :  { %v247_v39 = vmul.f32 1.442695, %v246_v38 }
 0x2ec   :  { %955 = vpow2.f32 %v247_v39 }
 0x2f1   :  { %v337_v41 = vpop.permute.xlu0 %336 }
 0x2f2   :  { %v956_v40 = vpop.eup %955  ;;  %v339_v42 = vsub.f32 %v1097_v60, %v337_v41  ;;  %v1162_v51 = vpop.permute.xlu1 %260 }
 0x2f3   :  { %882 = vmatmul.msk.f32.vlgmr.msrb.gmra.mxu3 %vm18_vm0, %v956_v40  ;;  %v251_v49 = vsel %vm18_vm0, %v956_v40, 0.0 }
 0x2f4   :  { %v340_v43 = vmul.f32 1.442695, %v339_v42 }
 0x2f6   :  { %957 = vpow2.f32 %v340_v43 }
 0x2fb   :  { %v430_v55 = vpop.permute.xlu1 %429 }
 0x2fc   :  { %v958_v47 = vpop.eup %957  ;;  %v432_v57 = vsub.f32 %v1101_v62, %v430_v55 }
 0x2fd   :  { %v344_v50 = vsel %vm18_vm0, %v958_v47, 0.0 }
 0x2fe   :  { %v608_v44 = vpop.xlane.xlu2 %607  ;;  %v433_v59 = vmul.f32 1.442695, %v432_v57 }
 0x306   :  { %v358_v46 = vpop.permute.xlu2 %357 }
 0x307   :  { %378 = vmatpush.msrb.mxu2 %v358_v46 }
 0x308   :  { %885 = vmatmul.msk.f32.vlgmr.msrb.gmra.mxu2 %vm18_vm0, %v958_v47 }
 0x30d   :  { %252 = vadd.xlane.f32.xlu2 %v251_v49 }
 0x315   :  { %345 = vadd.xlane.f32.xlu2 %v344_v50 }
 0x31c   :  { %v515_v52 = vpop.xlane.xlu0 %514 }
 0x31d   :  { %v516_v54 = vmax.f32 %v512_v53, %v515_v52 }
 0x31f   :  { %v517_v56 = vsub.f32 %v512_v53, %v516_v54  ;;  %576 = vst.msk [vmem:[#allocation2] sm:$0xff] %vm534_vm8, %v516_v54  ;;  %522 = vperm.xlu1 %930, %v516_v54  }
 0x321   :  { %v518_v58 = vmul.f32 1.442695, %v517_v56 }
 0x323   :  { %959 = vpow2.f32 %v518_v58 }
 0x324   :  { %961 = vpow2.f32 %v433_v59 }
 0x325   :  { %963 = vpow2.f32 %v425_v6 }
 0x326   :  { %v605_v60 = vld [vmem:[#allocation2] sm:$0xff] }
 0x327   :  { %543 = vrot.lane.b32.xlu1 %v1056_v17, %s988_s22  ;;  %v609_v61 = vmax.f32 %v605_v60, %v608_v44 }
 0x328   :  { %932 = vset.pattern.permute.xlu1 %v996_v63 }
 0x329   :  { %615 = vperm.xlu0 %931, %v609_v61   ;;  %v610_v0 = vsub.f32 %v605_v60, %v609_v61  ;;  %669 = vst.msk [vmem:[#allocation2] sm:$0xff] %vm627_vm9, %v609_v61  ;;  %v1170_v1 = vpop.eup %959 }
 0x32a   :  { %v962_v2 = vpop.eup %961 }
 0x32b   :  { %v964_v9 = vpop.eup %963  ;;  %v437_v10 = vsel %vm18_vm0, %v962_v2, 0.0  ;;  %v611_v11 = vmul.f32 1.442695, %v610_v0 }
 0x32d   :  { %539 = vperm.xlu2 %934, %v1170_v1   ;;  %965 = vpow2.f32 %v611_v11 }
 0x32e   :  { %967 = vpow2.f32 %v332_v21 }
 0x32f   :  { %v451_v62 = vpop.permute.xlu0 %450  ;;  %636 = vrot.lane.b32.xlu1 %v1056_v17, %s982_s18 }
 0x330   :  { %471 = vmatpush.msra.mxu3 %v451_v62  ;;  %v1177_v5 = vld [vmem:[#allocation2] sm:$0xff] }
 0x331   :  { %888 = vmatmul.msk.f32.vlgmr.msra.gmra.mxu3 %vm18_vm0, %v962_v2 }
 0x333   :  { %v1196_v22 = vpop.eup %965 }
 0x334   :  { %v968_v29 = vpop.eup %967 }
 0x335   :  { %936 = vset.pattern.permute.xlu2 %v996_v63 }
 0x33f   :  { %v701_v3 = vpop.xlane.xlu2 %700 }
 0x340   :  { %v1183_v7 = vmax.f32 %v1177_v5, %v701_v3 }
 0x342   :  { %v703_v17 = vsub.f32 %v1177_v5, %v1183_v7  ;;  %762 = vst.msk [vmem:[#allocation2] sm:$0xff] %vm720_vm10, %v1183_v7  ;;  %708 = vperm.xlu1 %932, %v1183_v7  }
 0x347   :  { %v730_v16 = vpop.permute.xlu2 %729 }
 0x34a   :  { %933 = vset.pattern.permute.xlu1 %v993_v25 }
 0x34b   :  { %446 = vperm.xlu1 %933, %v964_v9  }
 0x353   :  { %438 = vadd.xlane.f32.xlu0 %v437_v10  ;;  %937 = vset.pattern.permute.xlu1 %v986_v8 }
 0x376   :  { %v287_v12 = vpop.f32.mrf.mxu3 }
 0x377   :  { %291 = vrot.lane.b32.xlu0 %v287_v12, %s997_s23 }
 0x37f   :  { %632 = vperm.xlu0 %931, %v1196_v22  }
 0x380   :  { %v253_v27 = vpop.xlane.xlu2 %252 }
 0x381   :  { %v254_v8 = vadd.f32 %v253_v27, %v250_v26  ;;  %v704_v26 = vmul.f32 1.442695, %v703_v17 }
 0x383   :  { %256 = vst.msk [vmem:[#allocation3] sm:$0xff] %vm255_vm4, %v254_v8 }
 0x387   :  { %935 = vset.pattern.permute.xlu0 %v992_v15 }
 0x388   :  { %353 = vperm.xlu0 %935, %v968_v29   ;;  %v346_v14 = vpop.xlane.xlu2 %345 }
 0x38a   :  { %v342_v30 = vld [vmem:[#allocation3] sm:$0xff] }
 0x38b   :  { %v343_v31 = vmul.f32 %v968_v29, %v342_v30  ;;  %v380_v13 = vpop.f32.mrf.mxu2 }
 0x38c   :  { %384 = vrot.lane.b32.xlu1 %v380_v13, %s998_s24 }
 0x38d   :  { %v347_v19 = vadd.f32 %v346_v14, %v343_v31 }
 0x38f   :  { %349 = vst.msk [vmem:[#allocation3] sm:$0xff] %vm348_vm5, %v347_v19 }
 0x390   :  { %v540_v8 = vpop.permute.xlu2 %539 }
 0x391   :  { %v523_v32 = vpop.permute.xlu1 %522 }
 0x392   :  { %v525_v18 = vsub.f32 %v1140_v28, %v523_v32 }
 0x394   :  { %v526_v33 = vmul.f32 1.442695, %v525_v18 }
 0x396   :  { %969 = vpow2.f32 %v526_v33  ;;  %v435_v46 = vld [vmem:[#allocation3] sm:$0xff] }
 0x397   :  { %v436_v47 = vmul.f32 %v964_v9, %v435_v46 }
 0x399   :  { %v544_v34 = vpop.permute.xlu1 %543 }
 0x39a   :  { %564 = vmatpush.msra.mxu2 %v544_v34 }
 0x39b   :  { %v616_v36 = vpop.permute.xlu0 %615 }
 0x39c   :  { %750 = vmatpush.msrb.mxu2 %v730_v16  ;;  %v970_v15 = vpop.eup %969  ;;  %v618_v37 = vsub.f32 %v1125_v23, %v616_v36 }
 0x39d   :  { %891 = vmatmul.msk.f32.vlgmr.msra.gmra.mxu2 %vm18_vm0, %v970_v15  ;;  %v530_v52 = vsel %vm18_vm0, %v970_v15, 0.0 }
 0x39e   :  { %v619_v38 = vmul.f32 1.442695, %v618_v37 }
 0x3a0   :  { %971 = vpow2.f32 %v619_v38 }
 0x3a1   :  { %v637_v39 = vpop.permute.xlu1 %636 }
 0x3a2   :  { %657 = vmatpush.msrb.mxu3 %v637_v39 }
 0x3a6   :  { %v972_v40 = vpop.eup %971 }
 0x3a7   :  { %894 = vmatmul.msk.f32.vlgmr.msrb.gmra.mxu3 %vm18_vm0, %v972_v40  ;;  %v623_v11 = vsel %vm18_vm0, %v972_v40, 0.0 }
 0x3b4   :  { %v473_v41 = vpop.f32.mrf.mxu3  ;;  %v709_v28 = vpop.permute.xlu1 %708 }
 0x3b5   :  { %v711_v42 = vsub.f32 %v1147_v35, %v709_v28  ;;  %477 = vrot.lane.b32.xlu1 %v473_v41, %s999_s25  ;;  %v257_v35 = vld [vmem:[#allocation4] sm:$0xff] }
 0x3b6   :  { %v263_v53 = vmul.f32 %v1162_v51, %v257_v35 }
 0x3b7   :  { %v712_v43 = vmul.f32 1.442695, %v711_v42 }
 0x3b9   :  { %973 = vpow2.f32 %v712_v43 }
 0x3ba   :  { %975 = vpow2.f32 %v704_v26 }
 0x3bd   :  { %v447_v57 = vpop.permute.xlu1 %446 }
 0x3bf   :  { %v974_v44 = vpop.eup %973 }
 0x3c0   :  { %897 = vmatmul.msk.f32.vlgmr.msrb.gmra.mxu2 %vm18_vm0, %v974_v44  ;;  %v716_v23 = vsel %vm18_vm0, %v974_v44, 0.0  ;;  %v976_v27 = vpop.eup %975 }
 0x3c1   :  { %717 = vadd.xlane.f32.xlu0 %v716_v23 }
 0x3c6   :  { %v439_v49 = vpop.xlane.xlu0 %438 }
 0x3c7   :  { %v440_v50 = vadd.f32 %v439_v49, %v436_v47 }
 0x3c9   :  { %442 = vst.msk [vmem:[#allocation3] sm:$0xff] %vm441_vm6, %v440_v50 }
 0x3d0   :  { %v528_v12 = vld [vmem:[#allocation3] sm:$0xff] }
 0x3d1   :  { %v529_v16 = vmul.f32 %v1170_v1, %v528_v12 }
 0x3df   :  { %531 = vadd.xlane.f32.xlu1 %v530_v52 }
 0x3e9   :  { %v292_v54 = vpop.permute.xlu0 %291 }
 0x3ea   :  { %v294_v55 = vadd.f32 %v292_v54, %v263_v53 }
 0x3ec   :  { %296 = vst.msk [vmem:[#allocation4] sm:$0xff] %vm295_vm11, %v294_v55 }
 0x3f1   :  { %v633_v56 = vpop.permute.xlu0 %632 }
 0x3f3   :  { %v350_v59 = vld [vmem:[#allocation4] sm:$0xff] }
 0x3fa   :  { %v354_v58 = vpop.permute.xlu0 %353 }
 0x3fb   :  { %v356_v60 = vmul.f32 %v354_v58, %v350_v59 }
 0x3fe   :  { %v385_v61 = vpop.permute.xlu1 %384 }
 0x3ff   :  { %v387_v0 = vadd.f32 %v385_v61, %v356_v60 }
 0x401   :  { %389 = vst.msk [vmem:[#allocation4] sm:$0xff] %vm388_vm12, %v387_v0 }
 0x408   :  { %v443_v2 = vld [vmem:[#allocation4] sm:$0xff] }
 0x409   :  { %v449_v51 = vmul.f32 %v447_v57, %v443_v2 }
 0x420   :  { %v566_v62 = vpop.f32.mrf.mxu2 }
 0x421   :  { %570 = vrot.lane.b32.xlu2 %v566_v62, %s1000_s26 }
 0x427   :  { %v478_v3 = vpop.permute.xlu1 %477 }
 0x428   :  { %v480_v6 = vadd.f32 %v478_v3, %v449_v51 }
 0x42a   :  { %482 = vst.msk [vmem:[#allocation4] sm:$0xff] %vm481_vm13, %v480_v6  ;;  %v659_v9 = vpop.f32.mrf.mxu3 }
 0x42b   :  { %663 = vrot.lane.b32.xlu1 %v659_v9, %s1001_s27 }
 0x431   :  { %v536_v29 = vld [vmem:[#allocation4] sm:$0xff] }
 0x432   :  { %v542_v30 = vmul.f32 %v540_v8, %v536_v29 }
 0x434   :  { %v718_v39 = vpop.xlane.xlu0 %717 }
 0x443   :  { %v752_v10 = vpop.f32.mrf.mxu2 }
 0x444   :  { %756 = vrot.lane.b32.xlu1 %v752_v10, %s1002_s28 }
 0x44a   :  { %624 = vadd.xlane.f32.xlu2 %v623_v11 }
 0x452   :  { %v532_v21 = vpop.xlane.xlu1 %531 }
 0x453   :  { %v533_v24 = vadd.f32 %v532_v21, %v529_v16 }
 0x455   :  { %535 = vst.msk [vmem:[#allocation3] sm:$0xff] %vm534_vm8, %v533_v24 }
 0x45c   :  { %v621_v5 = vld [vmem:[#allocation3] sm:$0xff] }
 0x45d   :  { %v622_v7 = vmul.f32 %v1196_v22, %v621_v5 }
 0x462   :  { %725 = vperm.xlu2 %936, %v976_v27  }
 0x46a   :  { %939 = vset.pattern.permute.xlu2 %v990_v4 }
 0x47b   :  { %v571_v31 = vpop.permute.xlu2 %570 }
 0x47c   :  { %v573_v13 = vadd.f32 %v571_v31, %v542_v30 }
 0x47e   :  { %575 = vst.msk [vmem:[#allocation4] sm:$0xff] %vm574_vm14, %v573_v13 }
 0x485   :  { %v629_v1 = vld [vmem:[#allocation4] sm:$0xff] }
 0x486   :  { %v635_v14 = vmul.f32 %v633_v56, %v629_v1 }
 0x49d   :  { %v664_v19 = vpop.permute.xlu1 %663 }
 0x49e   :  { %v666_v32 = vadd.f32 %v664_v19, %v635_v14 }
 0x4a0   :  { %668 = vst.msk [vmem:[#allocation4] sm:$0xff] %vm667_vm15, %v666_v32 }
 0x4a7   :  { %v722_v33 = vld [vmem:[#allocation4] sm:$0xff] }
 0x4b6   :  { %v757_v36 = vpop.permute.xlu1 %756 }
 0x4bd   :  { %v625_v17 = vpop.xlane.xlu2 %624 }
 0x4be   :  { %v626_v4 = vadd.f32 %v625_v17, %v622_v7 }
 0x4c0   :  { %628 = vst.msk [vmem:[#allocation3] sm:$0xff] %vm627_vm9, %v626_v4 }
 0x4c5   :  { %v726_v18 = vpop.permute.xlu2 %725 }
 0x4c6   :  { %v728_v34 = vmul.f32 %v726_v18, %v722_v33 }
 0x4c7   :  { %v714_v15 = vld [vmem:[#allocation3] sm:$0xff] }
 0x4c8   :  { %v715_v37 = vmul.f32 %v976_v27, %v714_v15  ;;  %v759_v38 = vadd.f32 %v757_v36, %v728_v34 }
 0x4ca   :  { %v719_v40 = vadd.f32 %v718_v39, %v715_v37  ;;  %761 = vst.msk [vmem:[#allocation4] sm:$0xff] %vm760_vm1, %v759_v38 }
 0x4cc   :  { %721 = vst.msk [vmem:[#allocation3] sm:$0xff] %vm720_vm10, %v719_v40 }
 0x4d1   :  { %v797_v44 = vld [vmem:[#allocation4] sm:$0xff] }
 0x4d3   :  { %v805_v41 = vld [vmem:[#allocation3] sm:$0xff] }
 0x4d4   :  { %977 = vrcp.f32 %v805_v41 }
 0x4da   :  { %v978_v22 = vpop.eup %977 }
 0x4db   :  { %v807_v28 = vmul.f32 %v978_v22, %v805_v41 }
 0x4dd   :  { %v808_v42 = vsub.f32 2.0, %v807_v28 }
 0x4df   :  { %v809_v43 = vmul.f32 %v978_v22, %v808_v42 }
 0x4e1   :  { %813 = vperm.xlu0 %935, %v809_v43   ;;  %800 = vperm.xlu2 %939, %v809_v43  }
 0x4e2   :  { %774 = vperm.xlu1 %937, %v809_v43  }
 0x4e9   :  { %941 = vset.pattern.permute.xlu2 %v994_v45  ;;  %944 = vset.pattern.permute.xlu0 %v996_v63 }
 0x4ea   :  { %938 = vset.pattern.permute.xlu1 %v989_v20  ;;  %839 = vperm.xlu2 %941, %v809_v43  }
 0x4eb   :  { %787 = vperm.xlu1 %938, %v809_v43  }
 0x4f2   :  { %943 = vset.pattern.permute.xlu2 %v996_v63 }
 0x4f3   :  { %940 = vset.pattern.permute.xlu1 %v993_v25  ;;  %865 = vperm.xlu2 %943, %v809_v43  }
 0x4f4   :  { %826 = vperm.xlu1 %940, %v809_v43  }
 0x4fc   :  { %942 = vset.pattern.permute.xlu1 %v995_v48 }
 0x4fd   :  { %852 = vperm.xlu1 %942, %v809_v43  }
 0x53b   :  { %v801_v20 = vpop.permute.xlu2 %800 }
 0x53c   :  { %v803_v63 = vmul.f32 %v801_v20, %v797_v44 }
 0x544   :  { %v840_v25 = vpop.permute.xlu2 %839 }
 0x545   :  { %v842_v35 = vmul.f32 %v840_v25, %v797_v44 }
 0x54d   :  { %v866_v53 = vpop.permute.xlu2 %865 }
 0x54e   :  { %v868_v56 = vmul.f32 %v866_v53, %v797_v44 }
 0x553   :  { %v814_v45 = vpop.permute.xlu0 %813 }
 0x554   :  { %v775_v23 = vpop.permute.xlu1 %774  ;;  %v816_v50 = vmul.f32 %v814_v45, %v797_v44 }
 0x555   :  { %v777_v46 = vmul.f32 %v797_v44, %v775_v23 }
 0x557   :  { %778 = vst.msk [vmem:[%s1270_s3] sm:$0xff] %vm18_vm0, %v777_v46 }
 0x55d   :  { %v788_v47 = vpop.permute.xlu1 %787 }
 0x55e   :  { %v790_v49 = vmul.f32 %v797_v44, %v788_v47 }
 0x560   :  { %791 = vst.msk [vmem:[%s1270_s3] sm:$0xff] %vm202_vm7, %v790_v49 }
 0x561   :  { %804 = vst.msk [vmem:[%s1270_s3] sm:$0xff] %vm295_vm11, %v803_v63 }
 0x562   :  { %817 = vst.msk [vmem:[%s1270_s3] sm:$0xff] %vm388_vm12, %v816_v50 }
 0x566   :  { %v827_v48 = vpop.permute.xlu1 %826 }
 0x567   :  { %v829_v52 = vmul.f32 %v827_v48, %v797_v44 }
 0x569   :  { %830 = vst.msk [vmem:[%s1270_s3] sm:$0xff] %vm481_vm13, %v829_v52 }
 0x56a   :  { %843 = vst.msk [vmem:[%s1270_s3] sm:$0xff] %vm574_vm14, %v842_v35 }
 0x56f   :  { %v853_v54 = vpop.permute.xlu1 %852 }
 0x570   :  { %v855_v55 = vmul.f32 %v853_v54, %v797_v44 }
 0x572   :  { %856 = vst.msk [vmem:[%s1270_s3] sm:$0xff] %vm667_vm15, %v855_v55 }
 0x573   :  { %869 = vst.msk [vmem:[%s1270_s3] sm:$0xff] %vm760_vm1, %v868_v56 }

</bundles_post_ra>
